<compile_context>
chip_gen: v7x
topology: tpu7x:2x2x1
jax: 0.10.0
libtpu: 0.0.40
codegen_flags: <defaults>
</compile_context>

<pallas_src>
import functools

import jax
import jax.numpy as jnp
from jax.experimental import pallas as pl
from jax.experimental.pallas import tpu as pltpu

LN_EPS = 1e-5   # PyTorch nn.LayerNorm default


# ---------------------------------------------------------------------------
# hardware-aware configuration
# ---------------------------------------------------------------------------
@functools.lru_cache(maxsize=None)
def _vmem_config():
    """Returns (physical VMEM bytes, scoped vmem_limit_bytes to request)."""
    cap = 64 * 1024 * 1024
    try:
        info = pltpu.get_tpu_info()
        cap = int(getattr(info, "vmem_capacity_bytes", cap) or cap)
    except Exception:
        pass
    # ~48 MiB on v7x (64 MiB physical), ~96 MiB on v5e/v6e (128 MiB physical)
    limit = min((cap * 3) // 4, 112 * 1024 * 1024)
    return cap, int(limit)


def _cparams(dims):
    _, limit = _vmem_config()
    return pltpu.CompilerParams(dimension_semantics=dims,
                                vmem_limit_bytes=limit)


# ---------------------------------------------------------------------------
# tiling helpers
# ---------------------------------------------------------------------------
def _sublane_tile(n, target):
    """Largest divisor of n that is a multiple of 8 and <= target; else full n."""
    if n % 8 != 0:
        return n
    t = min(target, n)
    t -= t % 8
    while t >= 8:
        if n % t == 0:
            return t
        t -= 8
    return n


def _lane_tile(n, target):
    """Divisor of n that is a multiple of 128 and <= target; else full n."""
    if n <= target:
        return n
    t = target - (target % 128)
    while t >= 128:
        if n % t == 0:
            return t
        t -= 128
    return n


def _leading_tile(n, target):
    """Any divisor of n <= target (leading dim, no (8,128) constraint)."""
    if n <= target:
        return n
    for t in range(target, 0, -1):
        if n % t == 0:
            return t
    return n


# ---------------------------------------------------------------------------
# in-kernel math helpers
# ---------------------------------------------------------------------------
def _layernorm(x, w, b):
    x = x.astype(jnp.float32)
    mu = jnp.mean(x, axis=-1, keepdims=True)
    var = jnp.mean((x - mu) ** 2, axis=-1, keepdims=True)
    return (x - mu) * jax.lax.rsqrt(var + LN_EPS) * w + b


def _gelu_exact(x):
    # nn.GELU() default = exact (erf-based) GELU
    return 0.5 * x * (1.0 + jax.lax.erf(x * jnp.float32(0.7071067811865476)))


# ---------------------------------------------------------------------------
# Pallas kernels
# ---------------------------------------------------------------------------
def ln_qkv_kernel(num_heads, head_dim, x_ref, lnw_ref, lnb_ref, wqkv_ref,
                  bqkv_ref, xn_ref, q_ref, k_ref, v_ref):
    """ln_1 + QKV projection for one (batch, seq-tile). Emits head-major bf16."""
    E = x_ref.shape[-1]
    H, D = num_heads, head_dim
    xn = _layernorm(x_ref[0], lnw_ref[...], lnb_ref[...])          # [tl, E] f32
    xn_bf = xn.astype(jnp.bfloat16)
    xn_ref[0] = xn_bf
    qkv = jnp.dot(xn_bf, wqkv_ref[...],
                  preferred_element_type=jnp.float32) + bqkv_ref[...]   # [tl, 3E]
    scale = jnp.float32(1.0 / (D ** 0.5))
    # static relayout loop (H is small); heads land lane-dense as [H, tl, D]
    for h in range(H):
        q_ref[h] = (qkv[:, h * D:(h + 1) * D] * scale).astype(jnp.bfloat16)
        k_ref[h] = qkv[:, E + h * D:E + (h + 1) * D].astype(jnp.bfloat16)
        v_ref[h] = qkv[:, 2 * E + h * D:2 * E + (h + 1) * D].astype(jnp.bfloat16)


def flash_attn_kernel(q_ref, k_ref, v_ref, o_ref, m_sc, l_sc, acc_sc):
    """Causal online-softmax attention for one (batch*head, q-tile) vs one kv-tile."""
    tq = q_ref.shape[1]
    tkv = k_ref.shape[1]
    qi = pl.program_id(1)
    ki = pl.program_id(2)

    @pl.when(ki == 0)
    def _init():
        m_sc[...] = jnp.full_like(m_sc, -1e30)
        l_sc[...] = jnp.zeros_like(l_sc)
        acc_sc[...] = jnp.zeros_like(acc_sc)

    q_start = qi * tq
    kv_start = ki * tkv

    # skip KV tiles that lie entirely above the causal diagonal
    @pl.when(kv_start <= q_start + (tq - 1))
    def _compute():
        q = q_ref[0]                       # [tq, D] bf16, pre-scaled by 1/sqrt(D)
        k = k_ref[0]                       # [tkv, D] bf16
        s = jax.lax.dot_general(q, k, (((1,), (1,)), ((), ())),
                                preferred_element_type=jnp.float32)   # [tq, tkv]
        row = jax.lax.broadcasted_iota(jnp.int32, (tq, tkv), 0) + q_start
        col = jax.lax.broadcasted_iota(jnp.int32, (tq, tkv), 1) + kv_start
        s = jnp.where(col > row, jnp.float32(-1e30), s)
        m_prev = m_sc[...]
        m_new = jnp.maximum(m_prev, jnp.max(s, axis=-1, keepdims=True))
        alpha = jnp.exp(m_prev - m_new)
        p = jnp.exp(s - m_new)
        l_sc[...] = alpha * l_sc[...] + jnp.sum(p, axis=-1, keepdims=True)
        acc_sc[...] = alpha * acc_sc[...] + jax.lax.dot_general(
            p.astype(jnp.bfloat16), v_ref[0], (((1,), (0,)), ((), ())),
            preferred_element_type=jnp.float32)
        m_sc[...] = m_new

    @pl.when(ki == pl.num_programs(2) - 1)
    def _finalize():
        o_ref[0] = (acc_sc[...] * pl.reciprocal(l_sc[...], approx=True)
                    ).astype(o_ref.dtype)


def attn_out_mlp_kernel(num_heads, head_dim, ctx_ref, xn_ref, wo_ref, bo_ref,
                        ln2w_ref, ln2b_ref, w1_ref, b1_ref, w2_ref, b2_ref,
                        o_ref, ctx_sc):
    """out_proj + residual + ln_2 + MLP + residual for one (batch, seq-tile)."""
    H, D = num_heads, head_dim
    # gather heads into a lane-dense [tl, E] slab, then one full-K out_proj matmul
    for h in range(H):
        ctx_sc[:, h * D:(h + 1) * D] = ctx_ref[h]
    attn = jnp.dot(ctx_sc[...], wo_ref[...],
                   preferred_element_type=jnp.float32) + bo_ref[...]
    # NOTE: reference reassigns x = ln_1(x) before the residual, so the residual
    # adds to the *normalized* activations — reproduced exactly here.
    x2 = xn_ref[0].astype(jnp.float32) + attn
    xn2 = _layernorm(x2, ln2w_ref[...], ln2b_ref[...])
    h1 = jnp.dot(xn2.astype(jnp.bfloat16), w1_ref[...],
                 preferred_element_type=jnp.float32) + b1_ref[...]
    h1 = _gelu_exact(h1)
    m = jnp.dot(h1.astype(jnp.bfloat16), w2_ref[...],
                preferred_element_type=jnp.float32) + b2_ref[...]
    o_ref[0] = x2 + m


def lnf_kernel(x_ref, w_ref, b_ref, o_ref):
    o_ref[...] = _layernorm(x_ref[...], w_ref[...], b_ref[...]).astype(o_ref.dtype)


def lm_head_kernel(hn_ref, w_ref, o_ref):
    """LM head tile: hn [tl, B, E] bf16 x head_w [E, tv] bf16 -> logits [tl, B, tv] bf16."""
    o_ref[...] = jnp.einsum('lbe,ev->lbv', hn_ref[...], w_ref[...],
                            preferred_element_type=jnp.float32).astype(o_ref.dtype)


def clf_kernel(inv_len, hn_ref, w_ref, b_ref, o_ref, acc_ref):
    """Mean over sequence (accumulated across seq tiles) + classification head."""
    li = pl.program_id(0)

    @pl.when(li == 0)
    def _init():
        acc_ref[...] = jnp.zeros_like(acc_ref)

    acc_ref[...] += jnp.sum(hn_ref[...].astype(jnp.float32), axis=0)     # [B, E]

    @pl.when(li == pl.num_programs(0) - 1)
    def _finalize():
        hm = acc_ref[...] * jnp.float32(inv_len)
        o_ref[...] = jnp.dot(hm, w_ref[...],
                             preferred_element_type=jnp.float32) + b_ref[...]


# ---------------------------------------------------------------------------
# wrappers around pallas_call
# ---------------------------------------------------------------------------
def run_ln_qkv(x, lnw, lnb, wqkv_t, bqkv, num_heads, tl):
    B, L, E = x.shape
    H = num_heads
    D = E // H
    grid = (B, L // tl)
    x_spec = pl.BlockSpec((1, tl, E), lambda b, li: (b, li, 0))
    head_spec = pl.BlockSpec((H, tl, D), lambda b, li: (b, li, 0))
    return pl.pallas_call(
        functools.partial(ln_qkv_kernel, H, D),
        grid=grid,
        in_specs=[x_spec,
                  pl.BlockSpec((1, E), lambda b, li: (0, 0)),
                  pl.BlockSpec((1, E), lambda b, li: (0, 0)),
                  pl.BlockSpec((E, 3 * E), lambda b, li: (0, 0)),
                  pl.BlockSpec((1, 3 * E), lambda b, li: (0, 0))],
        out_specs=(pl.BlockSpec((1, tl, E), lambda b, li: (b, li, 0)),
                   head_spec, head_spec, head_spec),
        out_shape=(jax.ShapeDtypeStruct((B, L, E), jnp.bfloat16),
                   jax.ShapeDtypeStruct((B * H, L, D), jnp.bfloat16),
                   jax.ShapeDtypeStruct((B * H, L, D), jnp.bfloat16),
                   jax.ShapeDtypeStruct((B * H, L, D), jnp.bfloat16)),
        compiler_params=_cparams(("parallel", "parallel")),
    )(x, lnw, lnb, wqkv_t, bqkv)


def run_flash_attn(q, k, v, tq, tkv):
    BH, L, D = q.shape
    grid = (BH, L // tq, L // tkv)
    q_spec = pl.BlockSpec((1, tq, D), lambda bh, qi, ki: (bh, qi, 0))
    kv_spec = pl.BlockSpec((1, tkv, D), lambda bh, qi, ki: (bh, ki, 0))
    return pl.pallas_call(
        flash_attn_kernel,
        grid=grid,
        in_specs=[q_spec, kv_spec, kv_spec],
        out_specs=q_spec,
        out_shape=jax.ShapeDtypeStruct((BH, L, D), jnp.bfloat16),
        scratch_shapes=[pltpu.VMEM((tq, 1), jnp.float32),
                        pltpu.VMEM((tq, 1), jnp.float32),
                        pltpu.VMEM((tq, D), jnp.float32)],
        compiler_params=_cparams(("parallel", "parallel", "arbitrary")),
    )(q, k, v)


def run_attn_out_mlp(ctx, xn, wo_t, bo, ln2w, ln2b, w1_t, b1, w2_t, b2,
                     num_heads, tl):
    B, L, E = xn.shape
    H = num_heads
    D = E // H
    F = w1_t.shape[1]
    grid = (B, L // tl)
    return pl.pallas_call(
        functools.partial(attn_out_mlp_kernel, H, D),
        grid=grid,
        in_specs=[pl.BlockSpec((H, tl, D), lambda b, li: (b, li, 0)),
                  pl.BlockSpec((1, tl, E), lambda b, li: (b, li, 0)),
                  pl.BlockSpec((E, E), lambda b, li: (0, 0)),
                  pl.BlockSpec((1, E), lambda b, li: (0, 0)),
                  pl.BlockSpec((1, E), lambda b, li: (0, 0)),
                  pl.BlockSpec((1, E), lambda b, li: (0, 0)),
                  pl.BlockSpec((E, F), lambda b, li: (0, 0)),
                  pl.BlockSpec((1, F), lambda b, li: (0, 0)),
                  pl.BlockSpec((F, E), lambda b, li: (0, 0)),
                  pl.BlockSpec((1, E), lambda b, li: (0, 0))],
        out_specs=pl.BlockSpec((1, tl, E), lambda b, li: (b, li, 0)),
        out_shape=jax.ShapeDtypeStruct((B, L, E), jnp.float32),
        scratch_shapes=[pltpu.VMEM((tl, E), jnp.bfloat16)],
        compiler_params=_cparams(("parallel", "parallel")),
    )(ctx, xn, wo_t, bo, ln2w, ln2b, w1_t, b1, w2_t, b2)


def run_lnf(x_rows, w, b, tr):
    R, E = x_rows.shape
    grid = (R // tr,)
    row_spec = pl.BlockSpec((tr, E), lambda i: (i, 0))
    return pl.pallas_call(
        lnf_kernel,
        grid=grid,
        in_specs=[row_spec,
                  pl.BlockSpec((1, E), lambda i: (0, 0)),
                  pl.BlockSpec((1, E), lambda i: (0, 0))],
        out_specs=row_spec,
        out_shape=jax.ShapeDtypeStruct((R, E), jnp.bfloat16),
        compiler_params=_cparams(("parallel",)),
    )(x_rows, w, b)


def run_lm_head(hn_sf, head_wt, tsl, tv):
    L, B, E = hn_sf.shape
    V = head_wt.shape[1]
    grid = (L // tsl, V // tv)
    return pl.pallas_call(
        lm_head_kernel,
        grid=grid,
        in_specs=[pl.BlockSpec((tsl, B, E), lambda li, vi: (li, 0, 0)),
                  pl.BlockSpec((E, tv), lambda li, vi: (0, vi))],
        out_specs=pl.BlockSpec((tsl, B, tv), lambda li, vi: (li, 0, vi)),
        out_shape=jax.ShapeDtypeStruct((L, B, V), jnp.bfloat16),
        compiler_params=_cparams(("parallel", "parallel")),
    )(hn_sf, head_wt)


def run_clf(hn_sf, clf_wt, clf_b, tsl):
    L, B, E = hn_sf.shape
    C = clf_wt.shape[1]
    grid = (L // tsl,)
    return pl.pallas_call(
        functools.partial(clf_kernel, 1.0 / L),
        grid=grid,
        in_specs=[pl.BlockSpec((tsl, B, E), lambda li: (li, 0, 0)),
                  pl.BlockSpec((E, C), lambda li: (0, 0)),
                  pl.BlockSpec((1, C), lambda li: (0, 0))],
        out_specs=pl.BlockSpec((B, C), lambda li: (0, 0)),
        out_shape=jax.ShapeDtypeStruct((B, C), jnp.float32),
        scratch_shapes=[pltpu.VMEM((B, E), jnp.float32)],
        compiler_params=_cparams(("arbitrary",)),
    )(hn_sf, clf_wt, clf_b)


# ---------------------------------------------------------------------------
# full GPT2 forward (embedding glue in plain JAX, compute in Pallas)
# ---------------------------------------------------------------------------
def gpt2_forward(tokens, params, num_heads, classify=False,
                 seq_tile_target=256, attn_q_tile_target=256,
                 attn_kv_tile_target=256, head_seq_tile_target=128,
                 vocab_tile_target=2048):
    # tokens: [L, B] int32  (PyTorch "[sequence len, batch]" contract)
    L, B = tokens.shape
    E = params['sos'].shape[0]
    H = num_heads

    cap, _ = _vmem_config()
    big_vmem = cap >= 96 * 1024 * 1024          # v5e/v6e (128 MiB) vs v7x (64 MiB)
    if big_vmem:
        seq_tile_target = max(seq_tile_target, 512)
        attn_q_tile_target = max(attn_q_tile_target, 512)
        attn_kv_tile_target = max(attn_kv_tile_target, 512)
    lnf_row_target = 1024 if big_vmem else 256

    # --- embedding path (plain-JAX glue: gather / sos shift / positional add) ---
    h = params['token_emb'][tokens]                           # [L, B, E]
    sos = jnp.ones((1, B, E), jnp.float32) * params['sos']
    h = jnp.concatenate([sos, h[:-1]], axis=0)                # shift-right with SOS
    h = h + params['pos_emb'][:L][:, None, :]
    x = jnp.transpose(h, (1, 0, 2))                           # [B, L, E] f32

    tl = _sublane_tile(L, seq_tile_target)
    tq = _sublane_tile(L, attn_q_tile_target)
    tkv = _sublane_tile(L, attn_kv_tile_target)

    for lp in params['layers']:
        xn, q, k, v = run_ln_qkv(x, lp['ln1_w'], lp['ln1_b'],
                                 lp['wqkv_t'], lp['bqkv'], H, tl)
        ctx = run_flash_attn(q, k, v, tq, tkv)                # [B*H, L, D] bf16
        x = run_attn_out_mlp(ctx, xn, lp['wo_t'], lp['bo'],
                             lp['ln2_w'], lp['ln2_b'],
                             lp['w1_t'], lp['b1'], lp['w2_t'], lp['b2'], H, tl)

    tr = _sublane_tile(B * L, lnf_row_target)
    hn_rows = run_lnf(x.reshape(B * L, E), params['lnf_w'], params['lnf_b'], tr)
    # seq-first bf16 hn so the LM head writes logits directly as [L, B, V]
    hn_sf = jnp.transpose(hn_rows.reshape(B, L, E), (1, 0, 2))   # [L, B, E] bf16

    tsl = _leading_tile(L, head_seq_tile_target)
    tv = _lane_tile(params['head_wt'].shape[1], vocab_tile_target)
    logits = run_lm_head(hn_sf, params['head_wt'], tsl, tv)      # [L, B, V] bf16
    if not classify:
        return logits
    clf_logits = run_clf(hn_sf, params['clf_wt'], params['clf_b'], tsl)
    return clf_logits, logits


# ---------------------------------------------------------------------------
# deterministic parameter init (module shapes, pre-transposed / bf16 for the MXU)
# ---------------------------------------------------------------------------
def init_params(key, embed_dim, num_heads, num_layers,
                num_positions, num_vocab, num_classes):
    E = embed_dim
    keys = iter(jax.random.split(key, 8 + 8 * num_layers))

    def nrm(shape, scale=0.02):
        return scale * jax.random.normal(next(keys), shape, jnp.float32)

    params = dict(
        sos=jax.random.normal(next(keys), (E,), jnp.float32),
        token_emb=nrm((num_vocab, E)),
        pos_emb=nrm((num_positions, E)),
        lnf_w=jnp.ones((1, E), jnp.float32),
        lnf_b=jnp.zeros((1, E), jnp.float32),
        # head: Linear(E, V, bias=False) — weight [V, E], stored as W.T in bf16
        head_wt=nrm((num_vocab, E)).T.astype(jnp.bfloat16),
        # clf_head: Linear(E, C) — stored as W.T (tiny; kept f32)
        clf_wt=nrm((num_classes, E)).T,
        clf_b=jnp.zeros((1, num_classes), jnp.float32),
        layers=[],
    )
    for _ in range(num_layers):
        lp = dict(
            ln1_w=jnp.ones((1, E), jnp.float32),                  # ln_1.weight
            ln1_b=jnp.zeros((1, E), jnp.float32),                 # ln_1.bias
            wqkv_t=nrm((3 * E, E)).T.astype(jnp.bfloat16),        # attn.in_proj_weight.T
            bqkv=jnp.zeros((1, 3 * E), jnp.float32),              # attn.in_proj_bias
            wo_t=nrm((E, E)).T.astype(jnp.bfloat16),              # attn.out_proj.weight.T
            bo=jnp.zeros((1, E), jnp.float32),                    # attn.out_proj.bias
            ln2_w=jnp.ones((1, E), jnp.float32),                  # ln_2.weight
            ln2_b=jnp.zeros((1, E), jnp.float32),                 # ln_2.bias
            w1_t=nrm((4 * E, E)).T.astype(jnp.bfloat16),          # mlp[0].weight.T
            b1=jnp.zeros((1, 4 * E), jnp.float32),                # mlp[0].bias
            w2_t=nrm((E, 4 * E)).T.astype(jnp.bfloat16),          # mlp[2].weight.T
            b2=jnp.zeros((1, E), jnp.float32),                    # mlp[2].bias
        )
        params['layers'].append(lp)
    return params


if __name__ == "__main__":
    EMBED_DIM, NUM_HEADS, NUM_LAYERS = 32, 4, 2
    NUM_POSITIONS, NUM_VOCAB, NUM_CLASSES = 16, 64, 8
    SEQ_LEN, BATCH = 8, 2

    key = jax.random.PRNGKey(0)
    pkey, tkey = jax.random.split(key)
    params = init_params(pkey, EMBED_DIM, NUM_HEADS, NUM_LAYERS,
                         NUM_POSITIONS, NUM_VOCAB, NUM_CLASSES)
    tokens = jax.random.randint(tkey, (SEQ_LEN, BATCH), 0, NUM_VOCAB, jnp.int32)

    fwd = jax.jit(functools.partial(gpt2_forward, num_heads=NUM_HEADS, classify=True))
    clf_logits, logits = fwd(tokens, params)
    jax.block_until_ready((clf_logits, logits))

    assert logits.shape == (SEQ_LEN, BATCH, NUM_VOCAB)
    assert clf_logits.shape == (BATCH, NUM_CLASSES)
    assert bool(jnp.all(jnp.isfinite(logits.astype(jnp.float32))))
    assert bool(jnp.all(jnp.isfinite(clf_logits)))
    print("KERNEL_OK")
</pallas_src>

<mosaic_0001>
module attributes {stable_mosaic.version = 11 : i64} {
  func.func @flash_attn_kernel(%arg0: i32, %arg1: i32, %arg2: i32, %arg3: memref<1x8x8xbf16, #tpu.memory_space<vmem>>, %arg4: memref<1x8x8xbf16, #tpu.memory_space<vmem>>, %arg5: memref<1x8x8xbf16, #tpu.memory_space<vmem>>, %arg6: memref<1x8x8xbf16, #tpu.memory_space<vmem>>, %arg7: memref<8x1xf32, #tpu.memory_space<vmem>>, %arg8: memref<8x1xf32, #tpu.memory_space<vmem>>, %arg9: memref<8x8xf32, #tpu.memory_space<vmem>>) attributes {dimension_semantics = [#tpu.dimension_semantics<parallel>, #tpu.dimension_semantics<parallel>, #tpu.dimension_semantics<arbitrary>], iteration_bounds = array<i64: 8, 1, 1>, scalar_prefetch = 0 : i64, scratch_operands = 3 : i64, tpu.core_type = #tpu.core_type<tc>, window_params = [{transform_indices = @transform_0, window_bounds = array<i64: 1, 8, 8>}, {transform_indices = @transform_1, window_bounds = array<i64: 1, 8, 8>}, {transform_indices = @transform_2, window_bounds = array<i64: 1, 8, 8>}, {transform_indices = @transform_3, window_bounds = array<i64: 1, 8, 8>}]} {
    %c0_i32 = arith.constant 0 : i32
    %0 = arith.cmpi eq, %arg2, %c0_i32 : i32
    %1 = arith.extui %0 : i1 to i32
    %c0_i32_0 = arith.constant 0 : i32
    %2 = arith.cmpi ne, %1, %c0_i32_0 : i32
    scf.if %2 {
      %cst = arith.constant -1.000000e+30 : f32
      %12 = vector.broadcast %cst : f32 to vector<8x1xf32>
      %c0 = arith.constant 0 : index
      %c0_5 = arith.constant 0 : index
      %13 = vector.load %arg7[%c0, %c0_5] : memref<8x1xf32, #tpu.memory_space<vmem>>, vector<8x1xf32>
      tpu.vector_store %arg7[%c0, %c0_5], %12 {strides = array<i32>} : memref<8x1xf32, #tpu.memory_space<vmem>>, vector<8x1xf32>,
      %cst_6 = arith.constant 0.000000e+00 : f32
      %14 = vector.broadcast %cst_6 : f32 to vector<8x1xf32>
      %c0_7 = arith.constant 0 : index
      %c0_8 = arith.constant 0 : index
      %15 = vector.load %arg8[%c0_7, %c0_8] : memref<8x1xf32, #tpu.memory_space<vmem>>, vector<8x1xf32>
      tpu.vector_store %arg8[%c0_7, %c0_8], %14 {strides = array<i32>} : memref<8x1xf32, #tpu.memory_space<vmem>>, vector<8x1xf32>,
      %cst_9 = arith.constant 0.000000e+00 : f32
      %16 = vector.broadcast %cst_9 : f32 to vector<8x8xf32>
      %c0_10 = arith.constant 0 : index
      %c0_11 = arith.constant 0 : index
      %17 = vector.load %arg9[%c0_10, %c0_11] : memref<8x8xf32, #tpu.memory_space<vmem>>, vector<8x8xf32>
      tpu.vector_store %arg9[%c0_10, %c0_11], %16 {strides = array<i32>} : memref<8x8xf32, #tpu.memory_space<vmem>>, vector<8x8xf32>,
    } else {
    }
    %c8_i32 = arith.constant 8 : i32
    %3 = arith.muli %arg1, %c8_i32 : i32
    %c8_i32_1 = arith.constant 8 : i32
    %4 = arith.muli %arg2, %c8_i32_1 : i32
    %c7_i32 = arith.constant 7 : i32
    %5 = arith.addi %3, %c7_i32 : i32
    %6 = arith.cmpi sle, %4, %5 : i32
    %7 = arith.extui %6 : i1 to i32
    %c0_i32_2 = arith.constant 0 : i32
    %8 = arith.cmpi ne, %7, %c0_i32_2 : i32
    scf.if %8 {
      %c0 = arith.constant 0 : index
      %c0_5 = arith.constant 0 : index
      %c0_6 = arith.constant 0 : index
      %12 = vector.load %arg3[%c0, %c0_5, %c0_6] : memref<1x8x8xbf16, #tpu.memory_space<vmem>>, vector<1x8x8xbf16>
      %13 = vector.shape_cast %12 : vector<1x8x8xbf16> to vector<8x8xbf16>
      %c0_7 = arith.constant 0 : index
      %c0_8 = arith.constant 0 : index
      %c0_9 = arith.constant 0 : index
      %14 = vector.load %arg4[%c0_7, %c0_8, %c0_9] : memref<1x8x8xbf16, #tpu.memory_space<vmem>>, vector<1x8x8xbf16>
      %15 = vector.shape_cast %14 : vector<1x8x8xbf16> to vector<8x8xbf16>
      %cst = arith.constant dense<0.000000e+00> : vector<8x8xf32>
      %16 = tpu.matmul %13, %15, %cst {dimension_numbers = #tpu.dot_dimension_numbers<[1], [1], [0], [0], [0, 0, 1, 0], [], []>} : vector<8x8xbf16>, vector<8x8xbf16>, vector<8x8xf32> -> vector<8x8xf32>
      %17 = tpu.iota {dimensions = array<i32: 0>} : vector<8x8xi32>
      %18 = vector.broadcast %3 : i32 to vector<8x8xi32>
      %19 = arith.addi %17, %18 : vector<8x8xi32>
      %20 = tpu.iota {dimensions = array<i32: 1>} : vector<8x8xi32>
      %21 = vector.broadcast %4 : i32 to vector<8x8xi32>
      %22 = arith.addi %20, %21 : vector<8x8xi32>
      %23 = arith.cmpi sgt, %22, %19 : vector<8x8xi32>
      %cst_10 = arith.constant -1.000000e+30 : f32
      %24 = vector.broadcast %cst_10 : f32 to vector<8x8xf32>
      %25 = arith.select %23, %24, %16 : vector<8x8xi1>, vector<8x8xf32>
      %c0_11 = arith.constant 0 : index
      %c0_12 = arith.constant 0 : index
      %26 = vector.load %arg7[%c0_11, %c0_12] : memref<8x1xf32, #tpu.memory_space<vmem>>, vector<8x1xf32>
      %cst_13 = arith.constant dense<0xFF800000> : vector<8xf32>
      %27 = vector.multi_reduction <maximumf>, %25, %cst_13 [1] : vector<8x8xf32> to vector<8xf32>
      %28 = vector.shape_cast %27 : vector<8xf32> to vector<8x1xf32>
      %29 = arith.maximumf %26, %28 : vector<8x1xf32>
      %30 = arith.subf %26, %29 : vector<8x1xf32>
      %31 = math.exp %30 : vector<8x1xf32>
      %32 = vector.broadcast %29 : vector<8x1xf32> to vector<8x8xf32>
      %33 = arith.subf %25, %32 : vector<8x8xf32>
      %34 = math.exp %33 : vector<8x8xf32>
      %c0_14 = arith.constant 0 : index
      %c0_15 = arith.constant 0 : index
      %35 = vector.load %arg8[%c0_14, %c0_15] : memref<8x1xf32, #tpu.memory_space<vmem>>, vector<8x1xf32>
      %36 = arith.mulf %31, %35 : vector<8x1xf32>
      %cst_16 = arith.constant dense<0.000000e+00> : vector<8xf32>
      %37 = vector.multi_reduction <add>, %34, %cst_16 [1] : vector<8x8xf32> to vector<8xf32>
      %38 = vector.shape_cast %37 : vector<8xf32> to vector<8x1xf32>
      %39 = arith.addf %36, %38 : vector<8x1xf32>
      %c0_17 = arith.constant 0 : index
      %c0_18 = arith.constant 0 : index
      %40 = vector.load %arg8[%c0_17, %c0_18] : memref<8x1xf32, #tpu.memory_space<vmem>>, vector<8x1xf32>
      tpu.vector_store %arg8[%c0_17, %c0_18], %39 {strides = array<i32>} : memref<8x1xf32, #tpu.memory_space<vmem>>, vector<8x1xf32>,
      %c0_19 = arith.constant 0 : index
      %c0_20 = arith.constant 0 : index
      %41 = vector.load %arg9[%c0_19, %c0_20] : memref<8x8xf32, #tpu.memory_space<vmem>>, vector<8x8xf32>
      %42 = vector.broadcast %31 : vector<8x1xf32> to vector<8x8xf32>
      %43 = arith.mulf %42, %41 : vector<8x8xf32>
      %44 = arith.truncf %34 : vector<8x8xf32> to vector<8x8xbf16>
      %c0_21 = arith.constant 0 : index
      %c0_22 = arith.constant 0 : index
      %c0_23 = arith.constant 0 : index
      %45 = vector.load %arg5[%c0_21, %c0_22, %c0_23] : memref<1x8x8xbf16, #tpu.memory_space<vmem>>, vector<1x8x8xbf16>
      %46 = vector.shape_cast %45 : vector<1x8x8xbf16> to vector<8x8xbf16>
      %cst_24 = arith.constant dense<0.000000e+00> : vector<8x8xf32>
      %47 = tpu.matmul %44, %46, %cst_24 {dimension_numbers = #tpu.dot_dimension_numbers<[1], [0], [0], [1], [0, 0, 1, 1], [], []>} : vector<8x8xbf16>, vector<8x8xbf16>, vector<8x8xf32> -> vector<8x8xf32>
      %48 = arith.addf %43, %47 : vector<8x8xf32>
      %c0_25 = arith.constant 0 : index
      %c0_26 = arith.constant 0 : index
      %49 = vector.load %arg9[%c0_25, %c0_26] : memref<8x8xf32, #tpu.memory_space<vmem>>, vector<8x8xf32>
      tpu.vector_store %arg9[%c0_25, %c0_26], %48 {strides = array<i32>} : memref<8x8xf32, #tpu.memory_space<vmem>>, vector<8x8xf32>,
      %c0_27 = arith.constant 0 : index
      %c0_28 = arith.constant 0 : index
      %50 = vector.load %arg7[%c0_27, %c0_28] : memref<8x1xf32, #tpu.memory_space<vmem>>, vector<8x1xf32>
      tpu.vector_store %arg7[%c0_27, %c0_28], %29 {strides = array<i32>} : memref<8x1xf32, #tpu.memory_space<vmem>>, vector<8x1xf32>,
    } else {
    }
    %c0_i32_3 = arith.constant 0 : i32
    %9 = arith.cmpi eq, %arg2, %c0_i32_3 : i32
    %10 = arith.extui %9 : i1 to i32
    %c0_i32_4 = arith.constant 0 : i32
    %11 = arith.cmpi ne, %10, %c0_i32_4 : i32
    scf.if %11 {
      %c0 = arith.constant 0 : index
      %c0_5 = arith.constant 0 : index
      %12 = vector.load %arg9[%c0, %c0_5] : memref<8x8xf32, #tpu.memory_space<vmem>>, vector<8x8xf32>
      %c0_6 = arith.constant 0 : index
      %c0_7 = arith.constant 0 : index
      %13 = vector.load %arg8[%c0_6, %c0_7] : memref<8x1xf32, #tpu.memory_space<vmem>>, vector<8x1xf32>
      %14 = tpu.reciprocal %13 {approx = true} : vector<8x1xf32> -> vector<8x1xf32>
      %15 = vector.broadcast %14 : vector<8x1xf32> to vector<8x8xf32>
      %16 = arith.mulf %12, %15 : vector<8x8xf32>
      %17 = arith.truncf %16 : vector<8x8xf32> to vector<8x8xbf16>
      %c0_8 = arith.constant 0 : index
      %c0_9 = arith.constant 0 : index
      %c0_10 = arith.constant 0 : index
      %18 = vector.load %arg6[%c0_8, %c0_9, %c0_10] : memref<1x8x8xbf16, #tpu.memory_space<vmem>>, vector<1x8x8xbf16>
      %19 = vector.shape_cast %18 : vector<1x8x8xbf16> to vector<8x8xbf16>
      %20 = vector.shape_cast %17 : vector<8x8xbf16> to vector<1x8x8xbf16>
      tpu.vector_store %arg6[%c0_8, %c0_9, %c0_10], %20 {strides = array<i32>} : memref<1x8x8xbf16, #tpu.memory_space<vmem>>, vector<1x8x8xbf16>,
    } else {
    }
    return
  }
  func.func @transform_0(%arg0: i32, %arg1: i32, %arg2: i32) -> (i32, i32, i32) {
    %c0_i32 = arith.constant 0 : i32
    %c0_i32_0 = arith.constant 0 : i32
    return %arg0, %arg1, %c0_i32 : i32, i32, i32
  }
  func.func @transform_1(%arg0: i32, %arg1: i32, %arg2: i32) -> (i32, i32, i32) {
    %c0_i32 = arith.constant 0 : i32
    %c0_i32_0 = arith.constant 0 : i32
    return %arg0, %arg2, %c0_i32 : i32, i32, i32
  }
  func.func @transform_2(%arg0: i32, %arg1: i32, %arg2: i32) -> (i32, i32, i32) {
    %c0_i32 = arith.constant 0 : i32
    %c0_i32_0 = arith.constant 0 : i32
    return %arg0, %arg2, %c0_i32 : i32, i32, i32
  }
  func.func @transform_3(%arg0: i32, %arg1: i32, %arg2: i32) -> (i32, i32, i32) {
    %c0_i32 = arith.constant 0 : i32
    %c0_i32_0 = arith.constant 0 : i32
    return %arg0, %arg1, %c0_i32 : i32, i32, i32
  }
}

module attributes {stable_mosaic.version = 11 : i64} {
  func.func @lnf_kernel(%arg0: i32, %arg1: memref<16x32xf32, #tpu.memory_space<vmem>>, %arg2: memref<1x32xf32, #tpu.memory_space<vmem>>, %arg3: memref<1x32xf32, #tpu.memory_space<vmem>>, %arg4: memref<16x32xbf16, #tpu.memory_space<vmem>>) attributes {dimension_semantics = [#tpu.dimension_semantics<parallel>], iteration_bounds = array<i64: 1>, scalar_prefetch = 0 : i64, scratch_operands = 0 : i64, tpu.core_type = #tpu.core_type<tc>, window_params = [{transform_indices = @transform_0, window_bounds = array<i64: 16, 32>}, {pipeline_mode = #tpu.pipeline_mode<synchronous>, transform_indices = @transform_1, window_bounds = array<i64: 1, 32>}, {pipeline_mode = #tpu.pipeline_mode<synchronous>, transform_indices = @transform_2, window_bounds = array<i64: 1, 32>}, {transform_indices = @transform_3, window_bounds = array<i64: 16, 32>}]} {
    %c0 = arith.constant 0 : index
    %c0_0 = arith.constant 0 : index
    %0 = vector.load %arg1[%c0, %c0_0] : memref<16x32xf32, #tpu.memory_space<vmem>>, vector<16x32xf32>
    %c0_1 = arith.constant 0 : index
    %c0_2 = arith.constant 0 : index
    %1 = vector.load %arg2[%c0_1, %c0_2] : memref<1x32xf32, #tpu.memory_space<vmem>>, vector<1x32xf32>
    %c0_3 = arith.constant 0 : index
    %c0_4 = arith.constant 0 : index
    %2 = vector.load %arg3[%c0_3, %c0_4] : memref<1x32xf32, #tpu.memory_space<vmem>>, vector<1x32xf32>
    %cst = arith.constant dense<0.000000e+00> : vector<16xf32>
    %3 = vector.multi_reduction <add>, %0, %cst [1] : vector<16x32xf32> to vector<16xf32>
    %4 = vector.shape_cast %3 : vector<16xf32> to vector<16x1xf32>
    %cst_5 = arith.constant 3.200000e+01 : f32
    %5 = vector.broadcast %cst_5 : f32 to vector<16x1xf32>
    %6 = arith.divf %4, %5 : vector<16x1xf32>
    %7 = vector.broadcast %6 : vector<16x1xf32> to vector<16x32xf32>
    %8 = arith.subf %0, %7 : vector<16x32xf32>
    %9 = arith.mulf %8, %8 : vector<16x32xf32>
    %cst_6 = arith.constant dense<0.000000e+00> : vector<16xf32>
    %10 = vector.multi_reduction <add>, %9, %cst_6 [1] : vector<16x32xf32> to vector<16xf32>
    %11 = vector.shape_cast %10 : vector<16xf32> to vector<16x1xf32>
    %cst_7 = arith.constant 3.200000e+01 : f32
    %12 = vector.broadcast %cst_7 : f32 to vector<16x1xf32>
    %13 = arith.divf %11, %12 : vector<16x1xf32>
    %14 = vector.broadcast %6 : vector<16x1xf32> to vector<16x32xf32>
    %15 = arith.subf %0, %14 : vector<16x32xf32>
    %cst_8 = arith.constant 9.99999974E-6 : f32
    %16 = vector.broadcast %cst_8 : f32 to vector<16x1xf32>
    %17 = arith.addf %13, %16 : vector<16x1xf32>
    %18 = math.rsqrt %17 : vector<16x1xf32>
    %19 = vector.broadcast %18 : vector<16x1xf32> to vector<16x32xf32>
    %20 = arith.mulf %15, %19 : vector<16x32xf32>
    %21 = vector.broadcast %1 : vector<1x32xf32> to vector<16x32xf32>
    %22 = arith.mulf %20, %21 : vector<16x32xf32>
    %23 = vector.broadcast %2 : vector<1x32xf32> to vector<16x32xf32>
    %24 = arith.addf %22, %23 : vector<16x32xf32>
    %25 = arith.truncf %24 : vector<16x32xf32> to vector<16x32xbf16>
    %c0_9 = arith.constant 0 : index
    %c0_10 = arith.constant 0 : index
    %26 = vector.load %arg4[%c0_9, %c0_10] : memref<16x32xbf16, #tpu.memory_space<vmem>>, vector<16x32xbf16>
    tpu.vector_store %arg4[%c0_9, %c0_10], %25 {strides = array<i32>} : memref<16x32xbf16, #tpu.memory_space<vmem>>, vector<16x32xbf16>,
    return
  }
  func.func @transform_0(%arg0: i32) -> (i32, i32) {
    %c0_i32 = arith.constant 0 : i32
    %c0_i32_0 = arith.constant 0 : i32
    return %arg0, %c0_i32 : i32, i32
  }
  func.func @transform_1(%arg0: i32) -> (i32, i32) {
    %c0_i32 = arith.constant 0 : i32
    %c0_i32_0 = arith.constant 0 : i32
    %c0_i32_1 = arith.constant 0 : i32
    return %c0_i32, %c0_i32_0 : i32, i32
  }
  func.func @transform_2(%arg0: i32) -> (i32, i32) {
    %c0_i32 = arith.constant 0 : i32
    %c0_i32_0 = arith.constant 0 : i32
    %c0_i32_1 = arith.constant 0 : i32
    return %c0_i32, %c0_i32_0 : i32, i32
  }
  func.func @transform_3(%arg0: i32) -> (i32, i32) {
    %c0_i32 = arith.constant 0 : i32
    %c0_i32_0 = arith.constant 0 : i32
    return %arg0, %c0_i32 : i32, i32
  }
}

module attributes {stable_mosaic.version = 11 : i64} {
  func.func @attn_out_mlp_kernel(%arg0: i32, %arg1: i32, %arg2: memref<4x8x8xbf16, #tpu.memory_space<vmem>>, %arg3: memref<1x8x32xbf16, #tpu.memory_space<vmem>>, %arg4: memref<32x32xbf16, #tpu.memory_space<vmem>>, %arg5: memref<1x32xf32, #tpu.memory_space<vmem>>, %arg6: memref<1x32xf32, #tpu.memory_space<vmem>>, %arg7: memref<1x32xf32, #tpu.memory_space<vmem>>, %arg8: memref<32x128xbf16, #tpu.memory_space<vmem>>, %arg9: memref<1x128xf32, #tpu.memory_space<vmem>>, %arg10: memref<128x32xbf16, #tpu.memory_space<vmem>>, %arg11: memref<1x32xf32, #tpu.memory_space<vmem>>, %arg12: memref<1x8x32xf32, #tpu.memory_space<vmem>>, %arg13: memref<8x32xbf16, #tpu.memory_space<vmem>>) attributes {dimension_semantics = [#tpu.dimension_semantics<parallel>, #tpu.dimension_semantics<parallel>], iteration_bounds = array<i64: 2, 1>, scalar_prefetch = 0 : i64, scratch_operands = 1 : i64, tpu.core_type = #tpu.core_type<tc>, window_params = [{transform_indices = @transform_0, window_bounds = array<i64: 4, 8, 8>}, {transform_indices = @transform_1, window_bounds = array<i64: 1, 8, 32>}, {pipeline_mode = #tpu.pipeline_mode<synchronous>, transform_indices = @transform_2, window_bounds = array<i64: 32, 32>}, {pipeline_mode = #tpu.pipeline_mode<synchronous>, transform_indices = @transform_3, window_bounds = array<i64: 1, 32>}, {pipeline_mode = #tpu.pipeline_mode<synchronous>, transform_indices = @transform_4, window_bounds = array<i64: 1, 32>}, {pipeline_mode = #tpu.pipeline_mode<synchronous>, transform_indices = @transform_5, window_bounds = array<i64: 1, 32>}, {pipeline_mode = #tpu.pipeline_mode<synchronous>, transform_indices = @transform_6, window_bounds = array<i64: 32, 128>}, {pipeline_mode = #tpu.pipeline_mode<synchronous>, transform_indices = @transform_7, window_bounds = array<i64: 1, 128>}, {pipeline_mode = #tpu.pipeline_mode<synchronous>, transform_indices = @transform_8, window_bounds = array<i64: 128, 32>}, {pipeline_mode = #tpu.pipeline_mode<synchronous>, transform_indices = @transform_9, window_bounds = array<i64: 1, 32>}, {transform_indices = @transform_10, window_bounds = array<i64: 1, 8, 32>}]} {
    %c0 = arith.constant 0 : index
    %c0_0 = arith.constant 0 : index
    %c0_1 = arith.constant 0 : index
    %0 = vector.load %arg2[%c0, %c0_0, %c0_1] : memref<4x8x8xbf16, #tpu.memory_space<vmem>>, vector<1x8x8xbf16>
    %1 = vector.shape_cast %0 : vector<1x8x8xbf16> to vector<8x8xbf16>
    %c0_2 = arith.constant 0 : index
    %c0_3 = arith.constant 0 : index
    %2 = vector.load %arg13[%c0_2, %c0_3] : memref<8x32xbf16, #tpu.memory_space<vmem>>, vector<8x8xbf16>
    tpu.vector_store %arg13[%c0_2, %c0_3], %1 {strides = array<i32>} : memref<8x32xbf16, #tpu.memory_space<vmem>>, vector<8x8xbf16>,
    %c1 = arith.constant 1 : index
    %c0_4 = arith.constant 0 : index
    %c0_5 = arith.constant 0 : index
    %3 = vector.load %arg2[%c1, %c0_4, %c0_5] : memref<4x8x8xbf16, #tpu.memory_space<vmem>>, vector<1x8x8xbf16>
    %4 = vector.shape_cast %3 : vector<1x8x8xbf16> to vector<8x8xbf16>
    %c0_6 = arith.constant 0 : index
    %c8 = arith.constant 8 : index
    %5 = vector.load %arg13[%c0_6, %c8] : memref<8x32xbf16, #tpu.memory_space<vmem>>, vector<8x8xbf16>
    tpu.vector_store %arg13[%c0_6, %c8], %4 {strides = array<i32>} : memref<8x32xbf16, #tpu.memory_space<vmem>>, vector<8x8xbf16>,
    %c2 = arith.constant 2 : index
    %c0_7 = arith.constant 0 : index
    %c0_8 = arith.constant 0 : index
    %6 = vector.load %arg2[%c2, %c0_7, %c0_8] : memref<4x8x8xbf16, #tpu.memory_space<vmem>>, vector<1x8x8xbf16>
    %7 = vector.shape_cast %6 : vector<1x8x8xbf16> to vector<8x8xbf16>
    %c0_9 = arith.constant 0 : index
    %c16 = arith.constant 16 : index
    %8 = vector.load %arg13[%c0_9, %c16] : memref<8x32xbf16, #tpu.memory_space<vmem>>, vector<8x8xbf16>
    tpu.vector_store %arg13[%c0_9, %c16], %7 {strides = array<i32>} : memref<8x32xbf16, #tpu.memory_space<vmem>>, vector<8x8xbf16>,
    %c3 = arith.constant 3 : index
    %c0_10 = arith.constant 0 : index
    %c0_11 = arith.constant 0 : index
    %9 = vector.load %arg2[%c3, %c0_10, %c0_11] : memref<4x8x8xbf16, #tpu.memory_space<vmem>>, vector<1x8x8xbf16>
    %10 = vector.shape_cast %9 : vector<1x8x8xbf16> to vector<8x8xbf16>
    %c0_12 = arith.constant 0 : index
    %c24 = arith.constant 24 : index
    %11 = vector.load %arg13[%c0_12, %c24] : memref<8x32xbf16, #tpu.memory_space<vmem>>, vector<8x8xbf16>
    tpu.vector_store %arg13[%c0_12, %c24], %10 {strides = array<i32>} : memref<8x32xbf16, #tpu.memory_space<vmem>>, vector<8x8xbf16>,
    %c0_13 = arith.constant 0 : index
    %c0_14 = arith.constant 0 : index
    %12 = vector.load %arg13[%c0_13, %c0_14] : memref<8x32xbf16, #tpu.memory_space<vmem>>, vector<8x32xbf16>
    %c0_15 = arith.constant 0 : index
    %c0_16 = arith.constant 0 : index
    %13 = vector.load %arg4[%c0_15, %c0_16] : memref<32x32xbf16, #tpu.memory_space<vmem>>, vector<32x32xbf16>
    %cst = arith.constant dense<0.000000e+00> : vector<8x32xf32>
    %14 = tpu.matmul %12, %13, %cst {dimension_numbers = #tpu.dot_dimension_numbers<[1], [0], [0], [1], [0, 0, 1, 1], [], []>} : vector<8x32xbf16>, vector<32x32xbf16>, vector<8x32xf32> -> vector<8x32xf32>
    %c0_17 = arith.constant 0 : index
    %c0_18 = arith.constant 0 : index
    %15 = vector.load %arg5[%c0_17, %c0_18] : memref<1x32xf32, #tpu.memory_space<vmem>>, vector<1x32xf32>
    %16 = vector.broadcast %15 : vector<1x32xf32> to vector<8x32xf32>
    %17 = arith.addf %14, %16 : vector<8x32xf32>
    %c0_19 = arith.constant 0 : index
    %c0_20 = arith.constant 0 : index
    %c0_21 = arith.constant 0 : index
    %18 = vector.load %arg3[%c0_19, %c0_20, %c0_21] : memref<1x8x32xbf16, #tpu.memory_space<vmem>>, vector<1x8x32xbf16>
    %19 = vector.shape_cast %18 : vector<1x8x32xbf16> to vector<8x32xbf16>
    %20 = arith.extf %19 : vector<8x32xbf16> to vector<8x32xf32>
    %21 = arith.addf %20, %17 : vector<8x32xf32>
    %c0_22 = arith.constant 0 : index
    %c0_23 = arith.constant 0 : index
    %22 = vector.load %arg6[%c0_22, %c0_23] : memref<1x32xf32, #tpu.memory_space<vmem>>, vector<1x32xf32>
    %c0_24 = arith.constant 0 : index
    %c0_25 = arith.constant 0 : index
    %23 = vector.load %arg7[%c0_24, %c0_25] : memref<1x32xf32, #tpu.memory_space<vmem>>, vector<1x32xf32>
    %cst_26 = arith.constant dense<0.000000e+00> : vector<8xf32>
    %24 = vector.multi_reduction <add>, %21, %cst_26 [1] : vector<8x32xf32> to vector<8xf32>
    %25 = vector.shape_cast %24 : vector<8xf32> to vector<8x1xf32>
    %cst_27 = arith.constant 3.200000e+01 : f32
    %26 = vector.broadcast %cst_27 : f32 to vector<8x1xf32>
    %27 = arith.divf %25, %26 : vector<8x1xf32>
    %28 = vector.broadcast %27 : vector<8x1xf32> to vector<8x32xf32>
    %29 = arith.subf %21, %28 : vector<8x32xf32>
    %30 = arith.mulf %29, %29 : vector<8x32xf32>
    %cst_28 = arith.constant dense<0.000000e+00> : vector<8xf32>
    %31 = vector.multi_reduction <add>, %30, %cst_28 [1] : vector<8x32xf32> to vector<8xf32>
    %32 = vector.shape_cast %31 : vector<8xf32> to vector<8x1xf32>
    %cst_29 = arith.constant 3.200000e+01 : f32
    %33 = vector.broadcast %cst_29 : f32 to vector<8x1xf32>
    %34 = arith.divf %32, %33 : vector<8x1xf32>
    %35 = vector.broadcast %27 : vector<8x1xf32> to vector<8x32xf32>
    %36 = arith.subf %21, %35 : vector<8x32xf32>
    %cst_30 = arith.constant 9.99999974E-6 : f32
    %37 = vector.broadcast %cst_30 : f32 to vector<8x1xf32>
    %38 = arith.addf %34, %37 : vector<8x1xf32>
    %39 = math.rsqrt %38 : vector<8x1xf32>
    %40 = vector.broadcast %39 : vector<8x1xf32> to vector<8x32xf32>
    %41 = arith.mulf %36, %40 : vector<8x32xf32>
    %42 = vector.broadcast %22 : vector<1x32xf32> to vector<8x32xf32>
    %43 = arith.mulf %41, %42 : vector<8x32xf32>
    %44 = vector.broadcast %23 : vector<1x32xf32> to vector<8x32xf32>
    %45 = arith.addf %43, %44 : vector<8x32xf32>
    %46 = arith.truncf %45 : vector<8x32xf32> to vector<8x32xbf16>
    %c0_31 = arith.constant 0 : index
    %c0_32 = arith.constant 0 : index
    %47 = vector.load %arg8[%c0_31, %c0_32] : memref<32x128xbf16, #tpu.memory_space<vmem>>, vector<32x128xbf16>
    %cst_33 = arith.constant dense<0.000000e+00> : vector<8x128xf32>
    %48 = tpu.matmul %46, %47, %cst_33 {dimension_numbers = #tpu.dot_dimension_numbers<[1], [0], [0], [1], [0, 0, 1, 1], [], []>} : vector<8x32xbf16>, vector<32x128xbf16>, vector<8x128xf32> -> vector<8x128xf32>
    %c0_34 = arith.constant 0 : index
    %c0_35 = arith.constant 0 : index
    %49 = vector.load %arg9[%c0_34, %c0_35] : memref<1x128xf32, #tpu.memory_space<vmem>>, vector<1x128xf32>
    %50 = vector.broadcast %49 : vector<1x128xf32> to vector<8x128xf32>
    %51 = arith.addf %48, %50 : vector<8x128xf32>
    %cst_36 = arith.constant 5.000000e-01 : f32
    %52 = vector.broadcast %cst_36 : f32 to vector<8x128xf32>
    %53 = arith.mulf %52, %51 : vector<8x128xf32>
    %cst_37 = arith.constant 0.707106769 : f32
    %54 = vector.broadcast %cst_37 : f32 to vector<8x128xf32>
    %55 = arith.mulf %51, %54 : vector<8x128xf32>
    %56 = math.erf %55 : vector<8x128xf32>
    %cst_38 = arith.constant 1.000000e+00 : f32
    %57 = vector.broadcast %cst_38 : f32 to vector<8x128xf32>
    %58 = arith.addf %57, %56 : vector<8x128xf32>
    %59 = arith.mulf %53, %58 : vector<8x128xf32>
    %60 = arith.truncf %59 : vector<8x128xf32> to vector<8x128xbf16>
    %c0_39 = arith.constant 0 : index
    %c0_40 = arith.constant 0 : index
    %61 = vector.load %arg10[%c0_39, %c0_40] : memref<128x32xbf16, #tpu.memory_space<vmem>>, vector<128x32xbf16>
    %cst_41 = arith.constant dense<0.000000e+00> : vector<8x32xf32>
    %62 = tpu.matmul %60, %61, %cst_41 {dimension_numbers = #tpu.dot_dimension_numbers<[1], [0], [0], [1], [0, 0, 1, 1], [], []>} : vector<8x128xbf16>, vector<128x32xbf16>, vector<8x32xf32> -> vector<8x32xf32>
    %c0_42 = arith.constant 0 : index
    %c0_43 = arith.constant 0 : index
    %63 = vector.load %arg11[%c0_42, %c0_43] : memref<1x32xf32, #tpu.memory_space<vmem>>, vector<1x32xf32>
    %64 = vector.broadcast %63 : vector<1x32xf32> to vector<8x32xf32>
    %65 = arith.addf %62, %64 : vector<8x32xf32>
    %66 = arith.addf %21, %65 : vector<8x32xf32>
    %c0_44 = arith.constant 0 : index
    %c0_45 = arith.constant 0 : index
    %c0_46 = arith.constant 0 : index
    %67 = vector.load %arg12[%c0_44, %c0_45, %c0_46] : memref<1x8x32xf32, #tpu.memory_space<vmem>>, vector<1x8x32xf32>
    %68 = vector.shape_cast %67 : vector<1x8x32xf32> to vector<8x32xf32>
    %69 = vector.shape_cast %66 : vector<8x32xf32> to vector<1x8x32xf32>
    tpu.vector_store %arg12[%c0_44, %c0_45, %c0_46], %69 {strides = array<i32>} : memref<1x8x32xf32, #tpu.memory_space<vmem>>, vector<1x8x32xf32>,
    return
  }
  func.func @transform_0(%arg0: i32, %arg1: i32) -> (i32, i32, i32) {
    %c0_i32 = arith.constant 0 : i32
    %c0_i32_0 = arith.constant 0 : i32
    return %arg0, %arg1, %c0_i32 : i32, i32, i32
  }
  func.func @transform_1(%arg0: i32, %arg1: i32) -> (i32, i32, i32) {
    %c0_i32 = arith.constant 0 : i32
    %c0_i32_0 = arith.constant 0 : i32
    return %arg0, %arg1, %c0_i32 : i32, i32, i32
  }
  func.func @transform_2(%arg0: i32, %arg1: i32) -> (i32, i32) {
    %c0_i32 = arith.constant 0 : i32
    %c0_i32_0 = arith.constant 0 : i32
    %c0_i32_1 = arith.constant 0 : i32
    return %c0_i32, %c0_i32_0 : i32, i32
  }
  func.func @transform_3(%arg0: i32, %arg1: i32) -> (i32, i32) {
    %c0_i32 = arith.constant 0 : i32
    %c0_i32_0 = arith.constant 0 : i32
    %c0_i32_1 = arith.constant 0 : i32
    return %c0_i32, %c0_i32_0 : i32, i32
  }
  func.func @transform_4(%arg0: i32, %arg1: i32) -> (i32, i32) {
    %c0_i32 = arith.constant 0 : i32
    %c0_i32_0 = arith.constant 0 : i32
    %c0_i32_1 = arith.constant 0 : i32
    return %c0_i32, %c0_i32_0 : i32, i32
  }
  func.func @transform_5(%arg0: i32, %arg1: i32) -> (i32, i32) {
    %c0_i32 = arith.constant 0 : i32
    %c0_i32_0 = arith.constant 0 : i32
    %c0_i32_1 = arith.constant 0 : i32
    return %c0_i32, %c0_i32_0 : i32, i32
  }
  func.func @transform_6(%arg0: i32, %arg1: i32) -> (i32, i32) {
    %c0_i32 = arith.constant 0 : i32
    %c0_i32_0 = arith.constant 0 : i32
    %c0_i32_1 = arith.constant 0 : i32
    return %c0_i32, %c0_i32_0 : i32, i32
  }
  func.func @transform_7(%arg0: i32, %arg1: i32) -> (i32, i32) {
    %c0_i32 = arith.constant 0 : i32
    %c0_i32_0 = arith.constant 0 : i32
    %c0_i32_1 = arith.constant 0 : i32
    return %c0_i32, %c0_i32_0 : i32, i32
  }
  func.func @transform_8(%arg0: i32, %arg1: i32) -> (i32, i32) {
    %c0_i32 = arith.constant 0 : i32
    %c0_i32_0 = arith.constant 0 : i32
    %c0_i32_1 = arith.constant 0 : i32
    return %c0_i32, %c0_i32_0 : i32, i32
  }
  func.func @transform_9(%arg0: i32, %arg1: i32) -> (i32, i32) {
    %c0_i32 = arith.constant 0 : i32
    %c0_i32_0 = arith.constant 0 : i32
    %c0_i32_1 = arith.constant 0 : i32
    return %c0_i32, %c0_i32_0 : i32, i32
  }
  func.func @transform_10(%arg0: i32, %arg1: i32) -> (i32, i32, i32) {
    %c0_i32 = arith.constant 0 : i32
    %c0_i32_0 = arith.constant 0 : i32
    return %arg0, %arg1, %c0_i32 : i32, i32, i32
  }
}

module attributes {stable_mosaic.version = 11 : i64} {
  func.func @ln_qkv_kernel(%arg0: i32, %arg1: i32, %arg2: memref<1x8x32xf32, #tpu.memory_space<vmem>>, %arg3: memref<1x32xf32, #tpu.memory_space<vmem>>, %arg4: memref<1x32xf32, #tpu.memory_space<vmem>>, %arg5: memref<32x96xbf16, #tpu.memory_space<vmem>>, %arg6: memref<1x96xf32, #tpu.memory_space<vmem>>, %arg7: memref<1x8x32xbf16, #tpu.memory_space<vmem>>, %arg8: memref<4x8x8xbf16, #tpu.memory_space<vmem>>, %arg9: memref<4x8x8xbf16, #tpu.memory_space<vmem>>, %arg10: memref<4x8x8xbf16, #tpu.memory_space<vmem>>) attributes {dimension_semantics = [#tpu.dimension_semantics<parallel>, #tpu.dimension_semantics<parallel>], iteration_bounds = array<i64: 2, 1>, scalar_prefetch = 0 : i64, scratch_operands = 0 : i64, tpu.core_type = #tpu.core_type<tc>, window_params = [{transform_indices = @transform_0, window_bounds = array<i64: 1, 8, 32>}, {pipeline_mode = #tpu.pipeline_mode<synchronous>, transform_indices = @transform_1, window_bounds = array<i64: 1, 32>}, {pipeline_mode = #tpu.pipeline_mode<synchronous>, transform_indices = @transform_2, window_bounds = array<i64: 1, 32>}, {pipeline_mode = #tpu.pipeline_mode<synchronous>, transform_indices = @transform_3, window_bounds = array<i64: 32, 96>}, {pipeline_mode = #tpu.pipeline_mode<synchronous>, transform_indices = @transform_4, window_bounds = array<i64: 1, 96>}, {transform_indices = @transform_5, window_bounds = array<i64: 1, 8, 32>}, {transform_indices = @transform_6, window_bounds = array<i64: 4, 8, 8>}, {transform_indices = @transform_7, window_bounds = array<i64: 4, 8, 8>}, {transform_indices = @transform_8, window_bounds = array<i64: 4, 8, 8>}]} {
    %c0 = arith.constant 0 : index
    %c0_0 = arith.constant 0 : index
    %c0_1 = arith.constant 0 : index
    %0 = vector.load %arg2[%c0, %c0_0, %c0_1] : memref<1x8x32xf32, #tpu.memory_space<vmem>>, vector<1x8x32xf32>
    %1 = vector.shape_cast %0 : vector<1x8x32xf32> to vector<8x32xf32>
    %c0_2 = arith.constant 0 : index
    %c0_3 = arith.constant 0 : index
    %2 = vector.load %arg3[%c0_2, %c0_3] : memref<1x32xf32, #tpu.memory_space<vmem>>, vector<1x32xf32>
    %c0_4 = arith.constant 0 : index
    %c0_5 = arith.constant 0 : index
    %3 = vector.load %arg4[%c0_4, %c0_5] : memref<1x32xf32, #tpu.memory_space<vmem>>, vector<1x32xf32>
    %cst = arith.constant dense<0.000000e+00> : vector<8xf32>
    %4 = vector.multi_reduction <add>, %1, %cst [1] : vector<8x32xf32> to vector<8xf32>
    %5 = vector.shape_cast %4 : vector<8xf32> to vector<8x1xf32>
    %cst_6 = arith.constant 3.200000e+01 : f32
    %6 = vector.broadcast %cst_6 : f32 to vector<8x1xf32>
    %7 = arith.divf %5, %6 : vector<8x1xf32>
    %8 = vector.broadcast %7 : vector<8x1xf32> to vector<8x32xf32>
    %9 = arith.subf %1, %8 : vector<8x32xf32>
    %10 = arith.mulf %9, %9 : vector<8x32xf32>
    %cst_7 = arith.constant dense<0.000000e+00> : vector<8xf32>
    %11 = vector.multi_reduction <add>, %10, %cst_7 [1] : vector<8x32xf32> to vector<8xf32>
    %12 = vector.shape_cast %11 : vector<8xf32> to vector<8x1xf32>
    %cst_8 = arith.constant 3.200000e+01 : f32
    %13 = vector.broadcast %cst_8 : f32 to vector<8x1xf32>
    %14 = arith.divf %12, %13 : vector<8x1xf32>
    %15 = vector.broadcast %7 : vector<8x1xf32> to vector<8x32xf32>
    %16 = arith.subf %1, %15 : vector<8x32xf32>
    %cst_9 = arith.constant 9.99999974E-6 : f32
    %17 = vector.broadcast %cst_9 : f32 to vector<8x1xf32>
    %18 = arith.addf %14, %17 : vector<8x1xf32>
    %19 = math.rsqrt %18 : vector<8x1xf32>
    %20 = vector.broadcast %19 : vector<8x1xf32> to vector<8x32xf32>
    %21 = arith.mulf %16, %20 : vector<8x32xf32>
    %22 = vector.broadcast %2 : vector<1x32xf32> to vector<8x32xf32>
    %23 = arith.mulf %21, %22 : vector<8x32xf32>
    %24 = vector.broadcast %3 : vector<1x32xf32> to vector<8x32xf32>
    %25 = arith.addf %23, %24 : vector<8x32xf32>
    %26 = arith.truncf %25 : vector<8x32xf32> to vector<8x32xbf16>
    %c0_10 = arith.constant 0 : index
    %c0_11 = arith.constant 0 : index
    %c0_12 = arith.constant 0 : index
    %27 = vector.load %arg7[%c0_10, %c0_11, %c0_12] : memref<1x8x32xbf16, #tpu.memory_space<vmem>>, vector<1x8x32xbf16>
    %28 = vector.shape_cast %27 : vector<1x8x32xbf16> to vector<8x32xbf16>
    %29 = vector.shape_cast %26 : vector<8x32xbf16> to vector<1x8x32xbf16>
    tpu.vector_store %arg7[%c0_10, %c0_11, %c0_12], %29 {strides = array<i32>} : memref<1x8x32xbf16, #tpu.memory_space<vmem>>, vector<1x8x32xbf16>,
    %c0_13 = arith.constant 0 : index
    %c0_14 = arith.constant 0 : index
    %30 = vector.load %arg5[%c0_13, %c0_14] : memref<32x96xbf16, #tpu.memory_space<vmem>>, vector<32x96xbf16>
    %cst_15 = arith.constant dense<0.000000e+00> : vector<8x96xf32>
    %31 = tpu.matmul %26, %30, %cst_15 {dimension_numbers = #tpu.dot_dimension_numbers<[1], [0], [0], [1], [0, 0, 1, 1], [], []>} : vector<8x32xbf16>, vector<32x96xbf16>, vector<8x96xf32> -> vector<8x96xf32>
    %c0_16 = arith.constant 0 : index
    %c0_17 = arith.constant 0 : index
    %32 = vector.load %arg6[%c0_16, %c0_17] : memref<1x96xf32, #tpu.memory_space<vmem>>, vector<1x96xf32>
    %33 = vector.broadcast %32 : vector<1x96xf32> to vector<8x96xf32>
    %34 = arith.addf %31, %33 : vector<8x96xf32>
    %35 = vector.extract_strided_slice %34 {offsets = [0, 0], sizes = [8, 8], strides = [1, 1]} : vector<8x96xf32> to vector<8x8xf32>
    %cst_18 = arith.constant 0.353553385 : f32
    %36 = vector.broadcast %cst_18 : f32 to vector<8x8xf32>
    %37 = arith.mulf %35, %36 : vector<8x8xf32>
    %38 = arith.truncf %37 : vector<8x8xf32> to vector<8x8xbf16>
    %c0_19 = arith.constant 0 : index
    %c0_20 = arith.constant 0 : index
    %c0_21 = arith.constant 0 : index
    %39 = vector.load %arg8[%c0_19, %c0_20, %c0_21] : memref<4x8x8xbf16, #tpu.memory_space<vmem>>, vector<1x8x8xbf16>
    %40 = vector.shape_cast %39 : vector<1x8x8xbf16> to vector<8x8xbf16>
    %41 = vector.shape_cast %38 : vector<8x8xbf16> to vector<1x8x8xbf16>
    tpu.vector_store %arg8[%c0_19, %c0_20, %c0_21], %41 {strides = array<i32>} : memref<4x8x8xbf16, #tpu.memory_space<vmem>>, vector<1x8x8xbf16>,
    %42 = vector.extract_strided_slice %34 {offsets = [0, 32], sizes = [8, 8], strides = [1, 1]} : vector<8x96xf32> to vector<8x8xf32>
    %43 = arith.truncf %42 : vector<8x8xf32> to vector<8x8xbf16>
    %c0_22 = arith.constant 0 : index
    %c0_23 = arith.constant 0 : index
    %c0_24 = arith.constant 0 : index
    %44 = vector.load %arg9[%c0_22, %c0_23, %c0_24] : memref<4x8x8xbf16, #tpu.memory_space<vmem>>, vector<1x8x8xbf16>
    %45 = vector.shape_cast %44 : vector<1x8x8xbf16> to vector<8x8xbf16>
    %46 = vector.shape_cast %43 : vector<8x8xbf16> to vector<1x8x8xbf16>
    tpu.vector_store %arg9[%c0_22, %c0_23, %c0_24], %46 {strides = array<i32>} : memref<4x8x8xbf16, #tpu.memory_space<vmem>>, vector<1x8x8xbf16>,
    %47 = vector.extract_strided_slice %34 {offsets = [0, 64], sizes = [8, 8], strides = [1, 1]} : vector<8x96xf32> to vector<8x8xf32>
    %48 = arith.truncf %47 : vector<8x8xf32> to vector<8x8xbf16>
    %c0_25 = arith.constant 0 : index
    %c0_26 = arith.constant 0 : index
    %c0_27 = arith.constant 0 : index
    %49 = vector.load %arg10[%c0_25, %c0_26, %c0_27] : memref<4x8x8xbf16, #tpu.memory_space<vmem>>, vector<1x8x8xbf16>
    %50 = vector.shape_cast %49 : vector<1x8x8xbf16> to vector<8x8xbf16>
    %51 = vector.shape_cast %48 : vector<8x8xbf16> to vector<1x8x8xbf16>
    tpu.vector_store %arg10[%c0_25, %c0_26, %c0_27], %51 {strides = array<i32>} : memref<4x8x8xbf16, #tpu.memory_space<vmem>>, vector<1x8x8xbf16>,
    %52 = vector.extract_strided_slice %34 {offsets = [0, 8], sizes = [8, 8], strides = [1, 1]} : vector<8x96xf32> to vector<8x8xf32>
    %cst_28 = arith.constant 0.353553385 : f32
    %53 = vector.broadcast %cst_28 : f32 to vector<8x8xf32>
    %54 = arith.mulf %52, %53 : vector<8x8xf32>
    %55 = arith.truncf %54 : vector<8x8xf32> to vector<8x8xbf16>
    %c1 = arith.constant 1 : index
    %c0_29 = arith.constant 0 : index
    %c0_30 = arith.constant 0 : index
    %56 = vector.load %arg8[%c1, %c0_29, %c0_30] : memref<4x8x8xbf16, #tpu.memory_space<vmem>>, vector<1x8x8xbf16>
    %57 = vector.shape_cast %56 : vector<1x8x8xbf16> to vector<8x8xbf16>
    %58 = vector.shape_cast %55 : vector<8x8xbf16> to vector<1x8x8xbf16>
    tpu.vector_store %arg8[%c1, %c0_29, %c0_30], %58 {strides = array<i32>} : memref<4x8x8xbf16, #tpu.memory_space<vmem>>, vector<1x8x8xbf16>,
    %59 = vector.extract_strided_slice %34 {offsets = [0, 40], sizes = [8, 8], strides = [1, 1]} : vector<8x96xf32> to vector<8x8xf32>
    %60 = arith.truncf %59 : vector<8x8xf32> to vector<8x8xbf16>
    %c1_31 = arith.constant 1 : index
    %c0_32 = arith.constant 0 : index
    %c0_33 = arith.constant 0 : index
    %61 = vector.load %arg9[%c1_31, %c0_32, %c0_33] : memref<4x8x8xbf16, #tpu.memory_space<vmem>>, vector<1x8x8xbf16>
    %62 = vector.shape_cast %61 : vector<1x8x8xbf16> to vector<8x8xbf16>
    %63 = vector.shape_cast %60 : vector<8x8xbf16> to vector<1x8x8xbf16>
    tpu.vector_store %arg9[%c1_31, %c0_32, %c0_33], %63 {strides = array<i32>} : memref<4x8x8xbf16, #tpu.memory_space<vmem>>, vector<1x8x8xbf16>,
    %64 = vector.extract_strided_slice %34 {offsets = [0, 72], sizes = [8, 8], strides = [1, 1]} : vector<8x96xf32> to vector<8x8xf32>
    %65 = arith.truncf %64 : vector<8x8xf32> to vector<8x8xbf16>
    %c1_34 = arith.constant 1 : index
    %c0_35 = arith.constant 0 : index
    %c0_36 = arith.constant 0 : index
    %66 = vector.load %arg10[%c1_34, %c0_35, %c0_36] : memref<4x8x8xbf16, #tpu.memory_space<vmem>>, vector<1x8x8xbf16>
    %67 = vector.shape_cast %66 : vector<1x8x8xbf16> to vector<8x8xbf16>
    %68 = vector.shape_cast %65 : vector<8x8xbf16> to vector<1x8x8xbf16>
    tpu.vector_store %arg10[%c1_34, %c0_35, %c0_36], %68 {strides = array<i32>} : memref<4x8x8xbf16, #tpu.memory_space<vmem>>, vector<1x8x8xbf16>,
    %69 = vector.extract_strided_slice %34 {offsets = [0, 16], sizes = [8, 8], strides = [1, 1]} : vector<8x96xf32> to vector<8x8xf32>
    %cst_37 = arith.constant 0.353553385 : f32
    %70 = vector.broadcast %cst_37 : f32 to vector<8x8xf32>
    %71 = arith.mulf %69, %70 : vector<8x8xf32>
    %72 = arith.truncf %71 : vector<8x8xf32> to vector<8x8xbf16>
    %c2 = arith.constant 2 : index
    %c0_38 = arith.constant 0 : index
    %c0_39 = arith.constant 0 : index
    %73 = vector.load %arg8[%c2, %c0_38, %c0_39] : memref<4x8x8xbf16, #tpu.memory_space<vmem>>, vector<1x8x8xbf16>
    %74 = vector.shape_cast %73 : vector<1x8x8xbf16> to vector<8x8xbf16>
    %75 = vector.shape_cast %72 : vector<8x8xbf16> to vector<1x8x8xbf16>
    tpu.vector_store %arg8[%c2, %c0_38, %c0_39], %75 {strides = array<i32>} : memref<4x8x8xbf16, #tpu.memory_space<vmem>>, vector<1x8x8xbf16>,
    %76 = vector.extract_strided_slice %34 {offsets = [0, 48], sizes = [8, 8], strides = [1, 1]} : vector<8x96xf32> to vector<8x8xf32>
    %77 = arith.truncf %76 : vector<8x8xf32> to vector<8x8xbf16>
    %c2_40 = arith.constant 2 : index
    %c0_41 = arith.constant 0 : index
    %c0_42 = arith.constant 0 : index
    %78 = vector.load %arg9[%c2_40, %c0_41, %c0_42] : memref<4x8x8xbf16, #tpu.memory_space<vmem>>, vector<1x8x8xbf16>
    %79 = vector.shape_cast %78 : vector<1x8x8xbf16> to vector<8x8xbf16>
    %80 = vector.shape_cast %77 : vector<8x8xbf16> to vector<1x8x8xbf16>
    tpu.vector_store %arg9[%c2_40, %c0_41, %c0_42], %80 {strides = array<i32>} : memref<4x8x8xbf16, #tpu.memory_space<vmem>>, vector<1x8x8xbf16>,
    %81 = vector.extract_strided_slice %34 {offsets = [0, 80], sizes = [8, 8], strides = [1, 1]} : vector<8x96xf32> to vector<8x8xf32>
    %82 = arith.truncf %81 : vector<8x8xf32> to vector<8x8xbf16>
    %c2_43 = arith.constant 2 : index
    %c0_44 = arith.constant 0 : index
    %c0_45 = arith.constant 0 : index
    %83 = vector.load %arg10[%c2_43, %c0_44, %c0_45] : memref<4x8x8xbf16, #tpu.memory_space<vmem>>, vector<1x8x8xbf16>
    %84 = vector.shape_cast %83 : vector<1x8x8xbf16> to vector<8x8xbf16>
    %85 = vector.shape_cast %82 : vector<8x8xbf16> to vector<1x8x8xbf16>
    tpu.vector_store %arg10[%c2_43, %c0_44, %c0_45], %85 {strides = array<i32>} : memref<4x8x8xbf16, #tpu.memory_space<vmem>>, vector<1x8x8xbf16>,
    %86 = vector.extract_strided_slice %34 {offsets = [0, 24], sizes = [8, 8], strides = [1, 1]} : vector<8x96xf32> to vector<8x8xf32>
    %cst_46 = arith.constant 0.353553385 : f32
    %87 = vector.broadcast %cst_46 : f32 to vector<8x8xf32>
    %88 = arith.mulf %86, %87 : vector<8x8xf32>
    %89 = arith.truncf %88 : vector<8x8xf32> to vector<8x8xbf16>
    %c3 = arith.constant 3 : index
    %c0_47 = arith.constant 0 : index
    %c0_48 = arith.constant 0 : index
    %90 = vector.load %arg8[%c3, %c0_47, %c0_48] : memref<4x8x8xbf16, #tpu.memory_space<vmem>>, vector<1x8x8xbf16>
    %91 = vector.shape_cast %90 : vector<1x8x8xbf16> to vector<8x8xbf16>
    %92 = vector.shape_cast %89 : vector<8x8xbf16> to vector<1x8x8xbf16>
    tpu.vector_store %arg8[%c3, %c0_47, %c0_48], %92 {strides = array<i32>} : memref<4x8x8xbf16, #tpu.memory_space<vmem>>, vector<1x8x8xbf16>,
    %93 = vector.extract_strided_slice %34 {offsets = [0, 56], sizes = [8, 8], strides = [1, 1]} : vector<8x96xf32> to vector<8x8xf32>
    %94 = arith.truncf %93 : vector<8x8xf32> to vector<8x8xbf16>
    %c3_49 = arith.constant 3 : index
    %c0_50 = arith.constant 0 : index
    %c0_51 = arith.constant 0 : index
    %95 = vector.load %arg9[%c3_49, %c0_50, %c0_51] : memref<4x8x8xbf16, #tpu.memory_space<vmem>>, vector<1x8x8xbf16>
    %96 = vector.shape_cast %95 : vector<1x8x8xbf16> to vector<8x8xbf16>
    %97 = vector.shape_cast %94 : vector<8x8xbf16> to vector<1x8x8xbf16>
    tpu.vector_store %arg9[%c3_49, %c0_50, %c0_51], %97 {strides = array<i32>} : memref<4x8x8xbf16, #tpu.memory_space<vmem>>, vector<1x8x8xbf16>,
    %98 = vector.extract_strided_slice %34 {offsets = [0, 88], sizes = [8, 8], strides = [1, 1]} : vector<8x96xf32> to vector<8x8xf32>
    %99 = arith.truncf %98 : vector<8x8xf32> to vector<8x8xbf16>
    %c3_52 = arith.constant 3 : index
    %c0_53 = arith.constant 0 : index
    %c0_54 = arith.constant 0 : index
    %100 = vector.load %arg10[%c3_52, %c0_53, %c0_54] : memref<4x8x8xbf16, #tpu.memory_space<vmem>>, vector<1x8x8xbf16>
    %101 = vector.shape_cast %100 : vector<1x8x8xbf16> to vector<8x8xbf16>
    %102 = vector.shape_cast %99 : vector<8x8xbf16> to vector<1x8x8xbf16>
    tpu.vector_store %arg10[%c3_52, %c0_53, %c0_54], %102 {strides = array<i32>} : memref<4x8x8xbf16, #tpu.memory_space<vmem>>, vector<1x8x8xbf16>,
    return
  }
  func.func @transform_0(%arg0: i32, %arg1: i32) -> (i32, i32, i32) {
    %c0_i32 = arith.constant 0 : i32
    %c0_i32_0 = arith.constant 0 : i32
    return %arg0, %arg1, %c0_i32 : i32, i32, i32
  }
  func.func @transform_1(%arg0: i32, %arg1: i32) -> (i32, i32) {
    %c0_i32 = arith.constant 0 : i32
    %c0_i32_0 = arith.constant 0 : i32
    %c0_i32_1 = arith.constant 0 : i32
    return %c0_i32, %c0_i32_0 : i32, i32
  }
  func.func @transform_2(%arg0: i32, %arg1: i32) -> (i32, i32) {
    %c0_i32 = arith.constant 0 : i32
    %c0_i32_0 = arith.constant 0 : i32
    %c0_i32_1 = arith.constant 0 : i32
    return %c0_i32, %c0_i32_0 : i32, i32
  }
  func.func @transform_3(%arg0: i32, %arg1: i32) -> (i32, i32) {
    %c0_i32 = arith.constant 0 : i32
    %c0_i32_0 = arith.constant 0 : i32
    %c0_i32_1 = arith.constant 0 : i32
    return %c0_i32, %c0_i32_0 : i32, i32
  }
  func.func @transform_4(%arg0: i32, %arg1: i32) -> (i32, i32) {
    %c0_i32 = arith.constant 0 : i32
    %c0_i32_0 = arith.constant 0 : i32
    %c0_i32_1 = arith.constant 0 : i32
    return %c0_i32, %c0_i32_0 : i32, i32
  }
  func.func @transform_5(%arg0: i32, %arg1: i32) -> (i32, i32, i32) {
    %c0_i32 = arith.constant 0 : i32
    %c0_i32_0 = arith.constant 0 : i32
    return %arg0, %arg1, %c0_i32 : i32, i32, i32
  }
  func.func @transform_6(%arg0: i32, %arg1: i32) -> (i32, i32, i32) {
    %c0_i32 = arith.constant 0 : i32
    %c0_i32_0 = arith.constant 0 : i32
    return %arg0, %arg1, %c0_i32 : i32, i32, i32
  }
  func.func @transform_7(%arg0: i32, %arg1: i32) -> (i32, i32, i32) {
    %c0_i32 = arith.constant 0 : i32
    %c0_i32_0 = arith.constant 0 : i32
    return %arg0, %arg1, %c0_i32 : i32, i32, i32
  }
  func.func @transform_8(%arg0: i32, %arg1: i32) -> (i32, i32, i32) {
    %c0_i32 = arith.constant 0 : i32
    %c0_i32_0 = arith.constant 0 : i32
    return %arg0, %arg1, %c0_i32 : i32, i32, i32
  }
}

module attributes {stable_mosaic.version = 11 : i64} {
  func.func @clf_kernel(%arg0: i32, %arg1: memref<8x2x32xbf16, #tpu.memory_space<vmem>>, %arg2: memref<32x8xf32, #tpu.memory_space<vmem>>, %arg3: memref<1x8xf32, #tpu.memory_space<vmem>>, %arg4: memref<2x8xf32, #tpu.memory_space<vmem>>, %arg5: memref<2x32xf32, #tpu.memory_space<vmem>>) attributes {dimension_semantics = [#tpu.dimension_semantics<arbitrary>], iteration_bounds = array<i64: 1>, scalar_prefetch = 0 : i64, scratch_operands = 1 : i64, tpu.core_type = #tpu.core_type<tc>, window_params = [{transform_indices = @transform_0, window_bounds = array<i64: 8, 2, 32>}, {pipeline_mode = #tpu.pipeline_mode<synchronous>, transform_indices = @transform_1, window_bounds = array<i64: 32, 8>}, {pipeline_mode = #tpu.pipeline_mode<synchronous>, transform_indices = @transform_2, window_bounds = array<i64: 1, 8>}, {pipeline_mode = #tpu.pipeline_mode<synchronous>, transform_indices = @transform_3, window_bounds = array<i64: 2, 8>}]} {
    %c0_i32 = arith.constant 0 : i32
    %0 = arith.cmpi eq, %arg0, %c0_i32 : i32
    %1 = arith.extui %0 : i1 to i32
    %c0_i32_0 = arith.constant 0 : i32
    %2 = arith.cmpi ne, %1, %c0_i32_0 : i32
    scf.if %2 {
      %cst_9 = arith.constant 0.000000e+00 : f32
      %12 = vector.broadcast %cst_9 : f32 to vector<2x32xf32>
      %c0_10 = arith.constant 0 : index
      %c0_11 = arith.constant 0 : index
      %13 = vector.load %arg5[%c0_10, %c0_11] : memref<2x32xf32, #tpu.memory_space<vmem>>, vector<2x32xf32>
      tpu.vector_store %arg5[%c0_10, %c0_11], %12 {strides = array<i32>} : memref<2x32xf32, #tpu.memory_space<vmem>>, vector<2x32xf32>,
    } else {
    }
    %c0 = arith.constant 0 : index
    %c0_1 = arith.constant 0 : index
    %3 = vector.load %arg5[%c0, %c0_1] : memref<2x32xf32, #tpu.memory_space<vmem>>, vector<2x32xf32>
    %c0_2 = arith.constant 0 : index
    %c0_3 = arith.constant 0 : index
    %c0_4 = arith.constant 0 : index
    %4 = vector.load %arg1[%c0_2, %c0_3, %c0_4] : memref<8x2x32xbf16, #tpu.memory_space<vmem>>, vector<8x2x32xbf16>
    %5 = arith.extf %4 : vector<8x2x32xbf16> to vector<8x2x32xf32>
    %cst = arith.constant dense<0.000000e+00> : vector<2x32xf32>
    %6 = vector.multi_reduction <add>, %5, %cst [0] : vector<8x2x32xf32> to vector<2x32xf32>
    %7 = arith.addf %3, %6 : vector<2x32xf32>
    %c0_5 = arith.constant 0 : index
    %c0_6 = arith.constant 0 : index
    %8 = vector.load %arg5[%c0_5, %c0_6] : memref<2x32xf32, #tpu.memory_space<vmem>>, vector<2x32xf32>
    tpu.vector_store %arg5[%c0_5, %c0_6], %7 {strides = array<i32>} : memref<2x32xf32, #tpu.memory_space<vmem>>, vector<2x32xf32>,
    %c0_i32_7 = arith.constant 0 : i32
    %9 = arith.cmpi eq, %arg0, %c0_i32_7 : i32
    %10 = arith.extui %9 : i1 to i32
    %c0_i32_8 = arith.constant 0 : i32
    %11 = arith.cmpi ne, %10, %c0_i32_8 : i32
    scf.if %11 {
      %c0_9 = arith.constant 0 : index
      %c0_10 = arith.constant 0 : index
      %12 = vector.load %arg5[%c0_9, %c0_10] : memref<2x32xf32, #tpu.memory_space<vmem>>, vector<2x32xf32>
      %cst_11 = arith.constant 1.250000e-01 : f32
      %13 = vector.broadcast %cst_11 : f32 to vector<2x32xf32>
      %14 = arith.mulf %12, %13 : vector<2x32xf32>
      %c0_12 = arith.constant 0 : index
      %c0_13 = arith.constant 0 : index
      %15 = vector.load %arg2[%c0_12, %c0_13] : memref<32x8xf32, #tpu.memory_space<vmem>>, vector<32x8xf32>
      %cst_14 = arith.constant dense<0.000000e+00> : vector<2x8xf32>
      %16 = tpu.matmul %14, %15, %cst_14 {dimension_numbers = #tpu.dot_dimension_numbers<[1], [0], [0], [1], [0, 0, 1, 1], [], []>} : vector<2x32xf32>, vector<32x8xf32>, vector<2x8xf32> -> vector<2x8xf32>
      %c0_15 = arith.constant 0 : index
      %c0_16 = arith.constant 0 : index
      %17 = vector.load %arg3[%c0_15, %c0_16] : memref<1x8xf32, #tpu.memory_space<vmem>>, vector<1x8xf32>
      %18 = vector.broadcast %17 : vector<1x8xf32> to vector<2x8xf32>
      %19 = arith.addf %16, %18 : vector<2x8xf32>
      %c0_17 = arith.constant 0 : index
      %c0_18 = arith.constant 0 : index
      %20 = vector.load %arg4[%c0_17, %c0_18] : memref<2x8xf32, #tpu.memory_space<vmem>>, vector<2x8xf32>
      tpu.vector_store %arg4[%c0_17, %c0_18], %19 {strides = array<i32>} : memref<2x8xf32, #tpu.memory_space<vmem>>, vector<2x8xf32>,
    } else {
    }
    return
  }
  func.func @transform_0(%arg0: i32) -> (i32, i32, i32) {
    %c0_i32 = arith.constant 0 : i32
    %c0_i32_0 = arith.constant 0 : i32
    %c0_i32_1 = arith.constant 0 : i32
    return %arg0, %c0_i32, %c0_i32_0 : i32, i32, i32
  }
  func.func @transform_1(%arg0: i32) -> (i32, i32) {
    %c0_i32 = arith.constant 0 : i32
    %c0_i32_0 = arith.constant 0 : i32
    %c0_i32_1 = arith.constant 0 : i32
    return %c0_i32, %c0_i32_0 : i32, i32
  }
  func.func @transform_2(%arg0: i32) -> (i32, i32) {
    %c0_i32 = arith.constant 0 : i32
    %c0_i32_0 = arith.constant 0 : i32
    %c0_i32_1 = arith.constant 0 : i32
    return %c0_i32, %c0_i32_0 : i32, i32
  }
  func.func @transform_3(%arg0: i32) -> (i32, i32) {
    %c0_i32 = arith.constant 0 : i32
    %c0_i32_0 = arith.constant 0 : i32
    %c0_i32_1 = arith.constant 0 : i32
    return %c0_i32, %c0_i32_0 : i32, i32
  }
}

module attributes {stable_mosaic.version = 11 : i64} {
  func.func @lm_head_kernel(%arg0: i32, %arg1: i32, %arg2: memref<8x2x32xbf16, #tpu.memory_space<vmem>>, %arg3: memref<32x64xbf16, #tpu.memory_space<vmem>>, %arg4: memref<8x2x64xbf16, #tpu.memory_space<vmem>>) attributes {dimension_semantics = [#tpu.dimension_semantics<parallel>, #tpu.dimension_semantics<parallel>], iteration_bounds = array<i64: 1, 1>, scalar_prefetch = 0 : i64, scratch_operands = 0 : i64, tpu.core_type = #tpu.core_type<tc>, window_params = [{transform_indices = @transform_0, window_bounds = array<i64: 8, 2, 32>}, {transform_indices = @transform_1, window_bounds = array<i64: 32, 64>}, {transform_indices = @transform_2, window_bounds = array<i64: 8, 2, 64>}]} {
    %c0 = arith.constant 0 : index
    %c0_0 = arith.constant 0 : index
    %c0_1 = arith.constant 0 : index
    %0 = vector.load %arg2[%c0, %c0_0, %c0_1] : memref<8x2x32xbf16, #tpu.memory_space<vmem>>, vector<8x2x32xbf16>
    %c0_2 = arith.constant 0 : index
    %c0_3 = arith.constant 0 : index
    %1 = vector.load %arg3[%c0_2, %c0_3] : memref<32x64xbf16, #tpu.memory_space<vmem>>, vector<32x64xbf16>
    "tpu.trace_start"() <{level = 10 : i32, message = "lbe,ev->lbv"}> : () -> ()
    %cst = arith.constant dense<0.000000e+00> : vector<8x2x64xf32>
    %2 = tpu.matmul %0, %1, %cst {dimension_numbers = #tpu.dot_dimension_numbers<[2], [0], [0, 1], [1], [0, 0, 0, 1, 1, 1], [], []>} : vector<8x2x32xbf16>, vector<32x64xbf16>, vector<8x2x64xf32> -> vector<8x2x64xf32>
    "tpu.trace_stop"() : () -> ()
    %3 = arith.truncf %2 : vector<8x2x64xf32> to vector<8x2x64xbf16>
    %c0_4 = arith.constant 0 : index
    %c0_5 = arith.constant 0 : index
    %c0_6 = arith.constant 0 : index
    %4 = vector.load %arg4[%c0_4, %c0_5, %c0_6] : memref<8x2x64xbf16, #tpu.memory_space<vmem>>, vector<8x2x64xbf16>
    tpu.vector_store %arg4[%c0_4, %c0_5, %c0_6], %3 {strides = array<i32>} : memref<8x2x64xbf16, #tpu.memory_space<vmem>>, vector<8x2x64xbf16>,
    return
  }
  func.func @transform_0(%arg0: i32, %arg1: i32) -> (i32, i32, i32) {
    %c0_i32 = arith.constant 0 : i32
    %c0_i32_0 = arith.constant 0 : i32
    %c0_i32_1 = arith.constant 0 : i32
    return %arg0, %c0_i32, %c0_i32_0 : i32, i32, i32
  }
  func.func @transform_1(%arg0: i32, %arg1: i32) -> (i32, i32) {
    %c0_i32 = arith.constant 0 : i32
    %c0_i32_0 = arith.constant 0 : i32
    return %c0_i32, %arg1 : i32, i32
  }
  func.func @transform_2(%arg0: i32, %arg1: i32) -> (i32, i32, i32) {
    %c0_i32 = arith.constant 0 : i32
    %c0_i32_0 = arith.constant 0 : i32
    return %arg0, %c0_i32, %arg1 : i32, i32, i32
  }
}

</mosaic_0001>

<bundles_post_ra>
// kernel: mul.5
= control target key start
LH: loop header
LB: loop body
LE: loop exit
PB: predicated region body
PF: predicated region fallthrough
CT: control target
= control target key end

     0   :  { %s28_s0 = inlined_call_operand.vmem [shape: f32[32], index: 0, kind: input, shape index: {}]   ;;  %s29_s1 = inlined_call_operand.vmem [shape: f32[1,2,32], index: 1, kind: output, shape index: {}]  }
   0x1   :  { %v4_v0 = vld [vmem:[%s28_s0] ss:$0 sm:$0xff] }
   0x2   :  { %5 = vst [vmem:[%s29_s1] sm:$0x1] %v4_v0  ;;  %8 = vst [vmem:[%s29_s1 + $0x1] sm:$0x1] %v4_v0 }

// kernel: gpt2_forward.15
= control target key start
LH: loop header
LB: loop body
LE: loop exit
PB: predicated region body
PF: predicated region fallthrough
CT: control target
= control target key end

     0   :  { %vm18_vm0 = vcmask 261120   ;;  %vm70_vm1 = vcmask 257024   ;;  %s129_s0 = inlined_call_operand.vmem [shape: f32[16,32], index: 0, kind: input, shape index: {}]   ;;  %s130_s1 = inlined_call_operand.vmem [shape: f32[1,32], index: 1, kind: input, shape index: {}]   ;;  %s131_s2 = inlined_call_operand.vmem [shape: f32[1,32], index: 2, kind: input, shape index: {}]   ;;  %s132_s3 = inlined_call_operand.vmem [shape: bf16[16,32], index: 3, kind: output, shape index: {}]  }
   0x1   :  { %v14_v0 = vld [vmem:[%s129_s0] sm:$0xff]  ;;  %v15_v1 = vld [vmem:[%s129_s0 + $0x8] sm:$0xff] }
   0x2   :  { %v19_v2 = vsel %vm18_vm0, %v14_v0, 0.0  ;;  %v22_v3 = vsel %vm18_vm0, %v15_v1, 0.0  ;;  %v77_v21 = vld [vmem:[%s130_s1] ss:$0 sm:$0xff] }
   0x3   :  { %20 = vadd.xlane.f32.xlu0 %v19_v2  ;;  %v78_v23 = vld [vmem:[%s131_s2] ss:$0 sm:$0xff] }
   0x7   :  { %23 = vadd.xlane.f32.xlu0 %v22_v3 }
  0x90   :  { %v21_v4 = vpop.xlane.xlu0 %20 }
  0x91   :  { %v26_v5 = vmul.f32 0.03125, %v21_v4 }
  0x93   :  { %v28_v6 = vsub.f32 %v14_v0, %v26_v5 }
  0x94   :  { %v24_v7 = vpop.xlane.xlu0 %23 }
  0x95   :  { %v27_v8 = vmul.f32 0.03125, %v24_v7  ;;  %v30_v9 = vmul.f32 %v28_v6, %v28_v6 }
  0x97   :  { %v29_v10 = vsub.f32 %v15_v1, %v27_v8  ;;  %v32_v11 = vsel %vm18_vm0, %v30_v9, 0.0 }
  0x98   :  { %33 = vadd.xlane.f32.xlu1 %v32_v11 }
  0x99   :  { %v31_v12 = vmul.f32 %v29_v10, %v29_v10 }
  0x9b   :  { %v35_v13 = vsel %vm18_vm0, %v31_v12, 0.0 }
  0x9c   :  { %36 = vadd.xlane.f32.xlu1 %v35_v13 }
 0x125   :  { %v34_v14 = vpop.xlane.xlu1 %33 }
 0x126   :  { %v38_v15 = vmul.f32 0.03125, %v34_v14 }
 0x128   :  { %v40_v16 = vadd.f32 1e-05, %v38_v15 }
 0x129   :  { %v37_v17 = vpop.xlane.xlu1 %36 }
 0x12a   :  { %83 = vrsqrt.f32 %v40_v16  ;;  %v39_v18 = vmul.f32 0.03125, %v37_v17 }
 0x12c   :  { %v41_v19 = vadd.f32 1e-05, %v39_v18 }
 0x12e   :  { %85 = vrsqrt.f32 %v41_v19 }
 0x134   :  { %v84_v20 = vpop.eup %83 }
 0x135   :  { %v44_v22 = vmul.f32 %v84_v20, %v28_v6 }
 0x137   :  { %v52_v24 = vmul.f32 %v77_v21, %v44_v22 }
 0x138   :  { %v86_v25 = vpop.eup %85 }
 0x139   :  { %v60_v26 = vadd.f32 %v78_v23, %v52_v24  ;;  %v45_v27 = vmul.f32 %v86_v25, %v29_v10 }
 0x13b   :  { %v81_v28 = vpack.c.bf16 %v60_v26, %v60_v26  ;;  %v53_v29 = vmul.f32 %v77_v21, %v45_v27 }
 0x13d   :  { %71 = vst.msk [vmem:[%s132_s3] sm:$0xf] %vm70_vm1, %v81_v28  ;;  %v61_v30 = vadd.f32 %v78_v23, %v53_v29 }
 0x13f   :  { %v82_v31 = vpack.c.bf16 %v61_v30, %v61_v30 }
 0x141   :  { %72 = vst.msk [vmem:[%s132_s3 + $0x4] sm:$0xf] %vm70_vm1, %v82_v31 }

// kernel: gpt2_forward.10
= control target key start
LH: loop header
LB: loop body
LE: loop exit
PB: predicated region body
PF: predicated region fallthrough
CT: control target
= control target key end

     0   :  { %s654_s12 = smov 0   ;;  %s656_s13 = smov 0   ;;  %s710_s0 = inlined_call_operand.vmem [shape: bf16[8,8,8], index: 0, kind: input, shape index: {}]   ;;  %s711_s1 = inlined_call_operand.vmem [shape: bf16[8,8,8], index: 1, kind: input, shape index: {}]   ;;  %s712_s2 = inlined_call_operand.vmem [shape: bf16[8,8,8], index: 2, kind: input, shape index: {}]   ;;  %s713_s3 = inlined_call_operand.vmem [shape: bf16[8,8,8], index: 3, kind: output, shape index: {}]  }
   0x1   :  { %s658_s14 = smov 0  }
   0x2 LB: > { %s32_s15 = sadd.s32 1, %s624_s13  ;;  %p545_p0 = scmp.ge.s32.totalorder %s628_s14, 1  ;;  %s628_s14 = sphi %s658_s14, %s13_s14   ;;  %s624_s13 = sphi %s656_s13, %s715_s13   ;;  %s620_s12 = sphi %s654_s12, %s714_s12  }
   0x3   : > { %p34_p1 = scmp.ge.s32.totalorder %s32_s15, 8  ;;  %p190_p2 = scmp.lt.s32.totalorder %s628_s14, 9 }
   0x5   : > { %s717_s15 = smov (%p34_p1, %s32_s15), 0  ;;  %p191_p3 = pnand %p545_p0, %p190_p2 }
   0x6   : > { %p232_p4 = scmp.lt.s32.totalorder (!%p191_p3), %s620_s12, 7  ;;  %vm268_vm0 = vcmask (!%p191_p3), 64512   ;;  %v630_v0 = vmov (!%p191_p3), 0.0   ;;  %vm631_vm1 = vmmov (!%p191_p3), 0   ;;  %vm265_vm2 = vcmask (!%p191_p3), 7168  }
   0x7   : > { %194 = sbr.rel (%p191_p3) target bundleno = 824 (0x338), region = 32  ;;  %558 = vmatprep.subr.bf16.mxu0 (!%p191_p3), %v630_v0  ;;  %269 = vst.msk [vmem:[#allocation4] sm:$0xff] (!%p191_p3), %vm268_vm0, %v630_v0  ;;  %560 = vmatprep.mubr.msk.bf16.mxu0 (!%p191_p3), %vm631_vm1, %v630_v0  ;;  %v632_v4 = vmov (!%p191_p3), -1e+30   ;;  %v326_v5 = vlaneseq (!%p191_p3)  ;;  %v633_v14 = vmov (!%p191_p3), 0   ;;  %vm372_vm4 = vcmask (!%p191_p3), 1043456  }
   0x8   : > { %564 = vmatprep.subr.bf16.mxu1 (!%p191_p3), %v630_v0  ;;  %566 = vmatprep.mubr.msk.bf16.mxu1 (!%p191_p3), %vm631_vm1, %v630_v0  ;;  %266 = vst.msk [vmem:[#allocation2] sm:$0xff] (!%p191_p3), %vm265_vm2, %v632_v4  ;;  %267 = vst.msk [vmem:[#allocation3] sm:$0xff] (!%p191_p3), %vm265_vm2, %v630_v0  ;;  %vm432_vm5 = vcmask (!%p191_p3), 60416  }
   0x9   : > { %v327_v6 = vshrl.u32 (!%p191_p3), %v326_v5, 7  ;;  %v331_v7 = vand.u32 (!%p191_p3), 127, %v326_v5  ;;  %598 = vset.pattern.permute.xlu0 (!%p191_p3), %v633_v14  ;;  %599 = vset.pattern.permute.xlu1 (!%p191_p3), %v633_v14 }
   0xb   : > { %vm334_vm3 = vcmp.gt.s32.totalorder (!%p191_p3), %v331_v7, %v327_v6 }
   0xe   : > { %s719_s12 = smov (!%p232_p4, %s620_s12), 7  ;;  %v360_v35 = vld [vmem:[#allocation4] sm:$0xff] }
   0xf   : > { %s673_s16 = sshll.u32 %s719_s12, 2  ;;  %v336_v15 = vld [vmem:[#allocation2] sm:$0xff]  ;;  %v352_v29 = vld [vmem:[#allocation3] sm:$0xff] }
  0x10   : > { %s245_s19 = scalar_lea.vmem %s711_s1, %s673_s16  ;;  %s238_s22 = scalar_lea.vmem %s710_s0, %s673_s16 }
  0x11   : > { %v278_v1 = vld [vmem:[%s245_s19] sm:$0xf]  ;;  %s252_s25 = scalar_lea.vmem %s712_s2, %s673_s16  ;;  %s259_s28 = scalar_lea.vmem %s713_s3, %s673_s16 }
  0x12   : > { %v284_v2 = vsel %vm268_vm0, %v278_v1, 0  ;;  %v277_v3 = vld [vmem:[%s238_s22] sm:$0xf] }
  0x13   : > { %559 = vmatpush3.bf16.xpose.msra.mxu0 %v284_v2  ;;  %v368_v19 = vld [vmem:[%s252_s25] sm:$0xf] }
  0x14   : > { %v374_v20 = vsel %vm372_vm4, %v368_v19, 0 }
  0x15   : > { %565 = vmatpush3.bf16.msra.mxu1 %v374_v20 }
  0x1a   : > { %561 = vmatmul.mubr.msk.bf16.vlgmr.msra.gmra.mrb[0].mxu0 %vm268_vm0, %v277_v3 }
  0xed   : > { %v320_v8 = vpop.f32.mrb[0].mxu0 }
  0xee   : > { %v335_v9 = vsel %vm334_vm3, -1e+30, %v320_v8  ;;  %v562_v10 = vpop.f32.mrb[1].mxu0 }
  0xef   : > { %v323_v11 = vpop.f32.mrb[2].mxu0  ;;  %v337_v12 = vsel %vm268_vm0, %v335_v9, -inf }
  0xf0   : > { %338 = vmax.xlane.f32.xlu0 %v337_v12  ;;  %v563_v13 = vpop.f32.mrb[3].mxu0 }
 0x17d   : > { %v339_v16 = vpop.xlane.xlu0 %338 }
 0x17e   : > { %v340_v17 = vmax.f32 %v336_v15, %v339_v16 }
 0x180   : > { %v341_v18 = vsub.f32 %v336_v15, %v340_v17  ;;  %418 = vst.msk [vmem:[#allocation2] sm:$0xff] %vm265_vm2, %v340_v17  ;;  %346 = vperm.xlu0 %598, %v340_v17  }
 0x182   : > { %v342_v27 = vmul.f32 1.442695, %v341_v18 }
 0x1ff   : > { %v347_v21 = vpop.permute.xlu0 %346 }
 0x200   : > { %v349_v22 = vsub.f32 %v335_v9, %v347_v21 }
 0x202   : > { %v350_v23 = vmul.f32 1.442695, %v349_v22 }
 0x204   : > { %600 = vpow2.f32 %v350_v23 }
 0x205   : > { %602 = vpow2.f32 %v342_v27 }
 0x20e   : > { %v601_v24 = vpop.eup %600 }
 0x20f   : > { %v354_v25 = vsel %vm268_vm0, %v601_v24, 0.0  ;;  %v367_v26 = vpack.c.bf16 %v601_v24, %v601_v24  ;;  %v603_v28 = vpop.eup %602 }
 0x210   : > { %355 = vadd.xlane.f32.xlu1 %v354_v25  ;;  %v353_v30 = vmul.f32 %v603_v28, %v352_v29 }
 0x211   : > { %567 = vmatmul.mubr.msk.bf16.vlgmr.msra.gmra.mrb[0].mxu1 %vm268_vm0, %v367_v26 }
 0x221   : > { %363 = vperm.xlu1 %599, %v603_v28  }
 0x29d   : > { %v356_v31 = vpop.xlane.xlu1 %355 }
 0x29e   : > { %v357_v32 = vadd.f32 %v356_v31, %v353_v30 }
 0x2a0   : > { %359 = vst.msk [vmem:[#allocation3] sm:$0xff] %vm265_vm2, %v357_v32 }
 0x2a1   : > { %v364_v36 = vpop.permute.xlu1 %363 }
 0x2a2   : > { %v366_v37 = vmul.f32 %v364_v36, %v360_v35 }
 0x2a7   : > { %v423_v33 = vld [vmem:[#allocation3] sm:$0xff] }
 0x2a8   : > { %604 = vrcp.f32 %v423_v33 }
 0x2b2   : > { %v605_v34 = vpop.eup %604 }
 0x2b3   : > { %427 = vperm.xlu1 %599, %v605_v34  }
 0x2e4   : > { %v410_v38 = vpop.f32.mrb[0].mxu1 }
 0x2e5   : > { %v416_v39 = vadd.f32 %v410_v38, %v366_v37  ;;  %v568_v40 = vpop.f32.mrb[1].mxu1 }
 0x2e6   : > { %v413_v41 = vpop.f32.mrb[2].mxu1 }
 0x2e7   : > { %417 = vst.msk [vmem:[#allocation4] sm:$0xff] %vm268_vm0, %v416_v39  ;;  %v569_v42 = vpop.f32.mrb[3].mxu1 }
 0x2ee   : > { %v422_v43 = vld [vmem:[#allocation4] sm:$0xff] }
 0x332   : > { %v428_v44 = vpop.permute.xlu1 %427 }
 0x333   : > { %v430_v45 = vmul.f32 %v428_v44, %v422_v43 }
 0x335   : > { %v431_v46 = vpack.c.bf16 %v430_v45, %v430_v45 }
 0x337   : > { %433 = vst.msk [vmem:[%s259_s28] sm:$0xf] %vm432_vm5, %v431_v46 }
 0x338 PF: > { %s13_s14 = sadd.s32 1, %s628_s14   ;;  %s714_s12 = smov %s624_s13 }
 0x339   : > { %p10_p5 = scmp.ge.s32.totalorder %s13_s14, 10   ;;  %s715_s13 = smov %s717_s15 }
 0x33b   :  { %12 = sbr.rel (!%p10_p5) target bundleno = 2 (0x2), region = 80 }

// kernel: gpt2_forward.11
= control target key start
LH: loop header
LB: loop body
LE: loop exit
PB: predicated region body
PF: predicated region fallthrough
CT: control target
= control target key end

     0   :  { %s1036_s13 = smov 0   ;;  %s1038_s14 = smov 0   ;;  %s1161_s0 = inlined_call_operand.vmem [shape: bf16[8,8,8], index: 0, kind: input, shape index: {}]   ;;  %s1162_s1 = inlined_call_operand.vmem [shape: bf16[2,8,32], index: 1, kind: input, shape index: {}]   ;;  %s1163_s2 = inlined_call_operand.vmem [shape: bf16[32,32], index: 2, kind: input, shape index: {}]   ;;  %s1164_s3 = inlined_call_operand.vmem [shape: f32[1,32], index: 3, kind: input, shape index: {}]   ;;  %s1165_s4 = inlined_call_operand.vmem [shape: f32[1,32], index: 4, kind: input, shape index: {}]   ;;  %s1166_s5 = inlined_call_operand.vmem [shape: f32[1,32], index: 5, kind: input, shape index: {}]   ;;  %s1167_s6 = inlined_call_operand.vmem [shape: bf16[32,128], index: 6, kind: input, shape index: {}]   ;;  %s1168_s7 = inlined_call_operand.vmem [shape: f32[1,128], index: 7, kind: input, shape index: {}]   ;;  %s1169_s8 = inlined_call_operand.vmem [shape: bf16[128,32], index: 8, kind: input, shape index: {}]   ;;  %s1170_s9 = inlined_call_operand.vmem [shape: f32[1,32], index: 9, kind: input, shape index: {}]   ;;  %s1171_s10 = inlined_call_operand.vmem [shape: f32[2,8,32], index: 10, kind: output, shape index: {}]  }
   0x1   :  { %s1040_s15 = smov 0  }
   0x2 LB: > { %s32_s16 = sadd.s32 1, %s970_s14  ;;  %p827_p0 = scmp.ge.s32.totalorder %s974_s15, 1  ;;  %s974_s15 = sphi %s1040_s15, %s20_s15   ;;  %s970_s14 = sphi %s1038_s14, %s1173_s14   ;;  %s966_s13 = sphi %s1036_s13, %s1172_s13  }
   0x3   : > { %p34_p1 = scmp.ge.s32.totalorder %s32_s16, 2  ;;  %p346_p2 = scmp.lt.s32.totalorder %s974_s15, 3 }
   0x5   : > { %s1175_s16 = smov (%p34_p1, %s32_s16), 0  ;;  %p347_p3 = pnand %p827_p0, %p346_p2 }
   0x6   : > { %s828_s17 = sshll.u32 (!%p347_p3), %s966_s13, 2  ;;  %v936_v0 = vld [vmem:[%s1163_s2] sm:$0xff] (!%p347_p3)   ;;  %vm421_vm0 = vcmask (!%p347_p3), 60416   ;;  %v976_v1 = vmov (!%p347_p3), 0.0   ;;  %v937_v2 = vld [vmem:[%s1163_s2 + $0x8] sm:$0xff] (!%p347_p3)   ;;  %vm977_vm1 = vmmov (!%p347_p3), 0  }
   0x7   : > { %350 = sbr.rel (%p347_p3) target bundleno = 1127 (0x467), region = 60  ;;  %p397_p4 = scmp.lt.s32.totalorder (!%p347_p3), %s828_s17, 7  ;;  %871 = vmatprep.subr.bf16.mxu1 (!%p347_p3), %v976_v1  ;;  %887 = vmatprep.subr.bf16.mxu0 (!%p347_p3), %v976_v1  ;;  %vm429_vm2 = vcmask (!%p347_p3), 126016   ;;  %vm437_vm3 = vcmask (!%p347_p3), 191616   ;;  %vm445_vm4 = vcmask (!%p347_p3), 257216   ;;  %vm471_vm5 = vcmask (!%p347_p3), 261120  }
   0x8   : > { %872 = vmatpush3.bf16.msra.mxu1 (!%p347_p3), %v936_v0  ;;  %875 = vmatprep.mubr.msk.bf16.mxu1 (!%p347_p3), %vm977_vm1, %v976_v1  ;;  %s978_s26 = smov (!%p347_p3), 8   ;;  %s979_s27 = smov (!%p347_p3), 24   ;;  %v835_v12 = vld [vmem:[%s1164_s3] ss:$0 sm:$0xff] (!%p347_p3)  ;;  %v939_v27 = vld [vmem:[%s1167_s6 + $0x8] sm:$0xff] (!%p347_p3)   ;;  %v942_v30 = vld [vmem:[%s1169_s8 + $0x10] sm:$0xff] (!%p347_p3)  }
   0x9   : > { %873 = vmatprep.subr.bf16.mxu1 (!%p347_p3), %v976_v1  ;;  %903 = vmatprep.mubr.msk.bf16.mxu0 (!%p347_p3), %vm977_vm1, %v976_v1  ;;  %s980_s28 = smov (!%p347_p3), 16   ;;  %p405_p5 = scmp.lt.s32.totalorder (!%p347_p3), %s966_s13, 1  ;;  %v938_v26 = vld [vmem:[%s1167_s6] sm:$0xff] (!%p347_p3)   ;;  %v941_v29 = vld [vmem:[%s1169_s8 + $0x8] sm:$0xff] (!%p347_p3)   ;;  %v943_v41 = vld [vmem:[%s1169_s8 + $0x18] sm:$0xff] (!%p347_p3)  }
   0xa   : > { %v940_v28 = vld [vmem:[%s1169_s8] sm:$0xff] (!%p347_p3)   ;;  %v945_v43 = vld [vmem:[%s1169_s8 + $0x28] sm:$0xff] (!%p347_p3)   ;;  %v946_v44 = vld [vmem:[%s1169_s8 + $0x30] sm:$0xff] (!%p347_p3)  }
   0xb   : > { %888 = vmatpush3.bf16.msra.mxu0 (!%p347_p3), %v940_v28  ;;  %v839_v35 = vld [vmem:[%s1165_s4] ss:$0 sm:$0xff] (!%p347_p3)  ;;  %v947_v45 = vld [vmem:[%s1169_s8 + $0x38] sm:$0xff] (!%p347_p3)  }
   0xc   : > { %874 = vmatpush3.bf16.msra.mxu1 (!%p347_p3), %v937_v2  ;;  %889 = vmatprep.subr.bf16.mxu0 (!%p347_p3), %v976_v1  ;;  %v840_v37 = vld [vmem:[%s1166_s5] ss:$0 sm:$0xff] (!%p347_p3) }
   0xd   : > { %879 = vmatprep.subr.bf16.mxu1 (!%p347_p3), %v976_v1  ;;  %v944_v42 = vld [vmem:[%s1169_s8 + $0x20] sm:$0xff] (!%p347_p3)  }
   0xe   : > { %s1177_s17 = smov (!%p397_p4, %s828_s17), 7  ;;  %s1179_s13 = smov (!%p405_p5, %s966_s13), 1  ;;  %v841_v46 = vld [vmem:[%s1168_s7] ss:$0 sm:$0xff] }
   0xf   : > { %s829_s22 = sshll.u32 %s1177_s17, 2  ;;  %s830_s29 = sshll.u32 %s1179_s13, 2  ;;  %890 = vmatpush3.bf16.msra.mxu0 %v941_v29  ;;  %v845_v58 = vld [vmem:[%s1170_s9] ss:$0 sm:$0xff] }
  0x10   : > { %s403_s25 = scalar_lea.vmem %s1161_s0, %s829_s22  ;;  %s411_s12 = scalar_lea.vmem %s1162_s1, %s830_s29  ;;  %891 = vmatprep.subr.bf16.mxu0 %v976_v1 }
  0x11   : > { %v832_v3 = vld [vmem:[%s403_s25 + $0x4] sm:$0xf]  ;;  %v834_v4 = vld [vmem:[%s403_s25 + $0xc] sm:$0xf]  ;;  %v833_v5 = vld [vmem:[%s403_s25 + $0x8] sm:$0xf] }
  0x12   : > { %426 = vrot.lane.b32.xlu0 %v832_v3, %s978_s26  ;;  %442 = vrot.lane.b32.xlu1 %v834_v4, %s979_s27  ;;  %v420_v6 = vld [vmem:[%s403_s25] sm:$0xf]  ;;  %s831_s11 = sshll.u32 %s1179_s13, 3 }
  0x13   : > { %422 = vst.msk [vmem:[#allocation2] sm:$0xf] %vm421_vm0, %v420_v6  ;;  %v515_v11 = vld [vmem:[%s411_s12] sm:$0xf]  ;;  %892 = vmatpush3.bf16.msra.mxu0 %v942_v30  ;;  %s418_s18 = scalar_lea.vmem %s1171_s10, %s831_s11 }
  0x14   : > { %v516_v13 = vunpack.c.l.bf16 %v515_v11  ;;  %893 = vmatprep.subr.bf16.mxu0 %v976_v1 }
  0x16   : > { %434 = vrot.lane.b32.xlu0 %v833_v5, %s980_s28 }
  0x17   : > { %894 = vmatpush3.bf16.msra.mxu0 %v943_v41 }
  0x18   : > { %895 = vmatprep.subr.bf16.mxu0 %v976_v1 }
  0x1b   : > { %896 = vmatpush3.bf16.msra.mxu0 %v944_v42 }
  0x1c   : > { %897 = vmatprep.subr.bf16.mxu0 %v976_v1 }
  0x1f   : > { %898 = vmatpush3.bf16.msra.mxu0 %v945_v43 }
  0x20   : > { %899 = vmatprep.subr.bf16.mxu0 %v976_v1 }
  0x23   : > { %900 = vmatpush3.bf16.msra.mxu0 %v946_v44 }
  0x24   : > { %901 = vmatprep.subr.bf16.mxu0 %v976_v1 }
  0x27   : > { %902 = vmatpush3.bf16.msra.mxu0 %v947_v45 }
  0x84   : > { %v427_v7 = vpop.permute.xlu0 %426  ;;  %v443_v8 = vpop.permute.xlu1 %442 }
  0x85   : > { %430 = vst.msk [vmem:[#allocation2] sm:$0xf] %vm429_vm2, %v427_v7 }
  0x88   : > { %v435_v9 = vpop.permute.xlu0 %434 }
  0x89   : > { %438 = vst.msk [vmem:[#allocation2] sm:$0xf] %vm437_vm3, %v435_v9 }
  0x8a   : > { %446 = vst.msk [vmem:[#allocation2] sm:$0xf] %vm445_vm4, %v443_v8 }
  0x91   : > { %v447_v10 = vld [vmem:[#allocation2] sm:$0xf] }
  0x92   : > { %876 = vmatmul.mubr.msk.bf16.vlgmr.msra.gmra.mrb[0].mxu1 %vm471_vm5, %v447_v10 }
  0x93   : > { %883 = vmatprep.mubr.msk.bf16.mxu1 %vm977_vm1, %v976_v1  ;;  %880 = vmatpush3.bf16.msra.mxu1 %v938_v26 }
  0x94   : > { %881 = vmatprep.subr.bf16.mxu1 %v976_v1 }
  0x97   : > { %882 = vmatpush3.bf16.msra.mxu1 %v939_v27 }
 0x165   : > { %v509_v14 = vpop.f32.mrb[0].mxu1 }
 0x166   : > { %v510_v15 = vadd.f32 %v835_v12, %v509_v14  ;;  %v877_v16 = vpop.f32.mrb[1].mxu1 }
 0x167   : > { %v512_v17 = vpop.f32.mrb[2].mxu1 }
 0x168   : > { %v1089_v18 = vadd.f32 %v516_v13, %v510_v15  ;;  %v878_v19 = vpop.f32.mrb[3].mxu1 }
 0x16a   : > { %v520_v20 = vsel %vm471_vm5, %v1089_v18, 0.0 }
 0x16b   : > { %521 = vadd.xlane.f32.xlu1 %v520_v20 }
 0x1f8   : > { %v522_v21 = vpop.xlane.xlu1 %521 }
 0x1f9   : > { %v524_v22 = vmul.f32 0.03125, %v522_v21 }
 0x1fb   : > { %v525_v23 = vsub.f32 %v1089_v18, %v524_v22 }
 0x1fd   : > { %v526_v24 = vmul.f32 %v525_v23, %v525_v23 }
 0x1ff   : > { %v527_v25 = vsel %vm471_vm5, %v526_v24, 0.0 }
 0x200   : > { %528 = vadd.xlane.f32.xlu0 %v527_v25 }
 0x28d   : > { %v529_v31 = vpop.xlane.xlu0 %528 }
 0x28e   : > { %v530_v32 = vmul.f32 0.03125, %v529_v31 }
 0x290   : > { %v531_v33 = vadd.f32 1e-05, %v530_v32 }
 0x292   : > { %948 = vrsqrt.f32 %v531_v33 }
 0x29c   : > { %v949_v34 = vpop.eup %948 }
 0x29d   : > { %v533_v36 = vmul.f32 %v949_v34, %v525_v23 }
 0x29f   : > { %v540_v38 = vmul.f32 %v839_v35, %v533_v36 }
 0x2a1   : > { %v547_v39 = vadd.f32 %v840_v37, %v540_v38 }
 0x2a3   : > { %v548_v40 = vpack.c.bf16 %v547_v39, %v547_v39 }
 0x2a5   : > { %884 = vmatmul.mubr.msk.bf16.vlgmr.msra.gmra.mrb[4].mxu1 %vm471_vm5, %v548_v40 }
 0x378   : > { %v609_v47 = vpop.f32.mrb[4].mxu1 }
 0x379   : > { %v610_v48 = vadd.f32 %v841_v46, %v609_v47  ;;  %v885_v49 = vpop.f32.mrb[5].mxu1 }
 0x37a   : > { %v612_v50 = vpop.f32.mrb[6].mxu1 }
 0x37b   : > { %v616_v51 = vmul.f32 0.70710677, %v610_v48  ;;  %v886_v52 = vpop.f32.mrb[7].mxu1  ;;  %v615_v54 = vmul.f32 0.5, %v610_v48 }
 0x37d   : > { %950 = verf.f32 %v616_v51 }
 0x387   : > { %v951_v53 = vpop.eup %950 }
 0x388   : > { %v618_v55 = vadd.f32 1.0, %v951_v53 }
 0x38a   : > { %v619_v56 = vmul.f32 %v618_v55, %v615_v54 }
 0x38c   : > { %v620_v57 = vpack.c.bf16 %v619_v56, %v619_v56 }
 0x38e   : > { %904 = vmatmul.mubr.bf16.vlgmr.msra.gmra.mrb[0].mxu0 %v620_v57 }
 0x461   : > { %v726_v59 = vpop.f32.mrb[0].mxu0 }
 0x462   : > { %v727_v60 = vadd.f32 %v845_v58, %v726_v59  ;;  %v905_v61 = vpop.f32.mrb[1].mxu0 }
 0x463   : > { %v729_v62 = vpop.f32.mrb[2].mxu0 }
 0x464   : > { %v732_v63 = vadd.f32 %v727_v60, %v1089_v18  ;;  %v906_v0 = vpop.f32.mrb[3].mxu0 }
 0x466   : > { %733 = vst.msk [vmem:[%s418_s18] sm:$0xff] %vm471_vm5, %v732_v63 }
 0x467 PF: > { %s20_s15 = sadd.s32 1, %s974_s15   ;;  %s1172_s13 = smov %s970_s14 }
 0x468   : > { %p17_p6 = scmp.ge.s32.totalorder %s20_s15, 4   ;;  %s1173_s14 = smov %s1175_s16 }
 0x46a   :  { %19 = sbr.rel (!%p17_p6) target bundleno = 2 (0x2), region = 96 }

// kernel: gpt2_forward.9
= control target key start
LH: loop header
LB: loop body
LE: loop exit
PB: predicated region body
PF: predicated region fallthrough
CT: control target
= control target key end

     0   :  { %s937_s27 = smov 0   ;;  %s939_s28 = smov 0   ;;  %s1029_s0 = inlined_call_operand.vmem [shape: f32[2,8,32], index: 0, kind: input, shape index: {}]   ;;  %s1030_s1 = inlined_call_operand.vmem [shape: f32[1,32], index: 1, kind: input, shape index: {}]   ;;  %s1031_s2 = inlined_call_operand.vmem [shape: f32[1,32], index: 2, kind: input, shape index: {}]   ;;  %s1032_s3 = inlined_call_operand.vmem [shape: bf16[32,96], index: 3, kind: input, shape index: {}]   ;;  %s1033_s4 = inlined_call_operand.vmem [shape: f32[1,96], index: 4, kind: input, shape index: {}]   ;;  %s1034_s5 = inlined_call_operand.vmem [shape: bf16[2,8,32], index: 5, kind: output, shape index: {0}]   ;;  %s1035_s6 = inlined_call_operand.vmem [shape: bf16[8,8,8], index: 6, kind: output, shape index: {1}]   ;;  %s1036_s7 = inlined_call_operand.vmem [shape: bf16[8,8,8], index: 7, kind: output, shape index: {2}]   ;;  %s1037_s8 = inlined_call_operand.vmem [shape: bf16[8,8,8], index: 8, kind: output, shape index: {3}]  }
   0x1   :  { %s941_s29 = smov 0  }
   0x2 LB: > { %s31_s30 = sadd.s32 1, %s873_s28  ;;  %p773_p0 = scmp.ge.s32.totalorder %s877_s29, 1  ;;  %s877_s29 = sphi %s941_s29, %s19_s29   ;;  %s873_s28 = sphi %s939_s28, %s1039_s28   ;;  %s869_s27 = sphi %s937_s27, %s1038_s27  }
   0x3   : > { %p33_p1 = scmp.ge.s32.totalorder %s31_s30, 2  ;;  %p293_p2 = scmp.lt.s32.totalorder %s877_s29, 3 }
   0x5   : > { %s1041_s30 = smov (%p33_p1, %s31_s30), 0  ;;  %p294_p3 = pnand %p773_p0, %p293_p2 }
   0x6   : > { %p355_p4 = scmp.lt.s32.totalorder (!%p294_p3), %s869_s27, 1  ;;  %vm400_vm0 = vcmask (!%p294_p3), 261120   ;;  %v851_v7 = vld [vmem:[%s1032_s3] sm:$0xff] (!%p294_p3)   ;;  %v879_v8 = vmov (!%p294_p3), 0.0   ;;  %vm880_vm1 = vmmov (!%p294_p3), 0   ;;  %v852_v9 = vld [vmem:[%s1032_s3 + $0x8] sm:$0xff] (!%p294_p3)  }
   0x7   : > { %297 = sbr.rel (%p294_p3) target bundleno = 698 (0x2ba), region = 40  ;;  %806 = vmatprep.subr.bf16.mxu0 (!%p294_p3), %v879_v8  ;;  %810 = vmatprep.mubr.msk.bf16.mxu0 (!%p294_p3), %vm880_vm1, %v879_v8  ;;  %v782_v14 = vld [vmem:[%s1030_s1] ss:$0 sm:$0xff] (!%p294_p3)  ;;  %vm430_vm2 = vcmask (!%p294_p3), 257024   ;;  %s776_s26 = sshll.u32 (!%p294_p3), %s869_s27, 2  ;;  %vm500_vm3 = vcmask (!%p294_p3), 60416  }
   0x8   : > { %807 = vmatpush3.bf16.msra.mxu0 (!%p294_p3), %v851_v7  ;;  %v783_v16 = vld [vmem:[%s1031_s2] ss:$0 sm:$0xff] (!%p294_p3)  ;;  %p370_p5 = scmp.lt.s32.totalorder (!%p294_p3), %s776_s26, 7  ;;  %s881_s14 = smov (!%p294_p3), 96  }
   0x9   : > { %808 = vmatprep.subr.bf16.mxu0 (!%p294_p3), %v879_v8  ;;  %v784_v20 = vld [vmem:[%s1033_s4] ss:$0 sm:$0xff] (!%p294_p3)  ;;  %s882_s15 = smov (!%p294_p3), 120   ;;  %s883_s16 = smov (!%p294_p3), 64  }
   0xa   : > { %s884_s17 = smov (!%p294_p3), 72   ;;  %s885_s18 = smov (!%p294_p3), 88  }
   0xb   : > { %s886_s19 = smov (!%p294_p3), 56   ;;  %s887_s20 = smov (!%p294_p3), 80  }
   0xc   : > { %809 = vmatpush3.bf16.msra.mxu0 (!%p294_p3), %v852_v9  ;;  %s888_s21 = smov (!%p294_p3), 48   ;;  %s890_s23 = smov (!%p294_p3), 104  }
   0xd   : > { %s891_s24 = smov (!%p294_p3), 40  }
   0xe   : > { %s959_s9 = scalar_select %p355_p4, %s869_s27, 1 }
   0xf   : > { %s1043_s26 = smov (!%p370_p5, %s776_s26), 7 }
  0x10   : > { %s774_s10 = sshll.u32 %s959_s9, 3  ;;  %s775_s22 = sshll.u32 %s959_s9, 2 }
  0x11   : > { %s361_s13 = scalar_lea.vmem %s1029_s0, %s774_s10  ;;  %s368_s25 = scalar_lea.vmem %s1034_s5, %s775_s22 }
  0x12   : > { %v397_v0 = vld [vmem:[%s361_s13] sm:$0xff]  ;;  %s988_s9 = sshll.u32 %s1043_s26, 2  ;;  %s889_s22 = smov 112  }
  0x13   : > { %v401_v1 = vsel %vm400_vm0, %v397_v0, 0.0  ;;  %s994_s27 = scalar_lea.vmem %s1035_s6, %s988_s9  ;;  %s385_s10 = scalar_lea.vmem %s1036_s7, %s988_s9 }
  0x14   : > { %402 = vadd.xlane.f32.xlu0 %v401_v1  ;;  %s394_s13 = scalar_lea.vmem %s1037_s8, %s988_s9 }
  0xa1   : > { %v403_v2 = vpop.xlane.xlu0 %402 }
  0xa2   : > { %v405_v3 = vmul.f32 0.03125, %v403_v2 }
  0xa4   : > { %v406_v4 = vsub.f32 %v397_v0, %v405_v3 }
  0xa6   : > { %v407_v5 = vmul.f32 %v406_v4, %v406_v4 }
  0xa8   : > { %v408_v6 = vsel %vm400_vm0, %v407_v5, 0.0 }
  0xa9   : > { %409 = vadd.xlane.f32.xlu0 %v408_v6 }
 0x136   : > { %v410_v10 = vpop.xlane.xlu0 %409 }
 0x137   : > { %v411_v11 = vmul.f32 0.03125, %v410_v10 }
 0x139   : > { %v412_v12 = vadd.f32 1e-05, %v411_v11 }
 0x13b   : > { %853 = vrsqrt.f32 %v412_v12 }
 0x145   : > { %v854_v13 = vpop.eup %853 }
 0x146   : > { %v414_v15 = vmul.f32 %v854_v13, %v406_v4 }
 0x148   : > { %v421_v17 = vmul.f32 %v782_v14, %v414_v15 }
 0x14a   : > { %v428_v18 = vadd.f32 %v783_v16, %v421_v17 }
 0x14c   : > { %v429_v19 = vpack.c.bf16 %v428_v18, %v428_v18 }
 0x14e   : > { %431 = vst.msk [vmem:[%s368_s25] sm:$0xf] %vm430_vm2, %v429_v19  ;;  %811 = vmatmul.mubr.msk.bf16.vlgmr.msra.gmra.mrb[0].mxu0 %vm400_vm0, %v429_v19 }
 0x221   : > { %v492_v21 = vpop.f32.mrb[0].mxu0 }
 0x222   : > { %v493_v22 = vadd.f32 %v784_v20, %v492_v21  ;;  %v812_v23 = vpop.f32.mrb[1].mxu0 }
 0x223   : > { %v495_v24 = vpop.f32.mrb[2].mxu0 }
 0x224   : > { %v498_v25 = vmul.f32 0.35355338, %v493_v22  ;;  %v801_v26 = vpack.c.bf16 %v493_v22, %v493_v22  ;;  %v813_v27 = vpop.f32.mrb[3].mxu0 }
 0x226   : > { %v499_v28 = vpack.c.bf16 %v498_v25, %v498_v25  ;;  %506 = vrot.lane.b32.xlu1 %v801_v26, %s881_s14 }
 0x228   : > { %517 = vrot.lane.b32.xlu0 %v499_v28, %s882_s15  ;;  %501 = vst.msk [vmem:[%s994_s27] sm:$0xf] %vm500_vm3, %v499_v28 }
 0x22a   : > { %510 = vrot.lane.b32.xlu1 %v801_v26, %s883_s16 }
 0x22c   : > { %552 = vrot.lane.b32.xlu0 %v801_v26, %s884_s17 }
 0x22e   : > { %522 = vrot.lane.b32.xlu1 %v801_v26, %s885_s18 }
 0x232   : > { %527 = vrot.lane.b32.xlu1 %v801_v26, %s886_s19 }
 0x236   : > { %537 = vrot.lane.b32.xlu1 %v801_v26, %s887_s20 }
 0x23a   : > { %542 = vrot.lane.b32.xlu1 %v801_v26, %s888_s21 }
 0x23e   : > { %532 = vrot.lane.b32.xlu1 %v499_v28, %s889_s22 }
 0x242   : > { %547 = vrot.lane.b32.xlu1 %v499_v28, %s890_s23 }
 0x246   : > { %557 = vrot.lane.b32.xlu1 %v801_v26, %s891_s24 }
 0x298   : > { %v507_v29 = vpop.permute.xlu1 %506 }
 0x299   : > { %509 = vst.msk [vmem:[%s385_s10] sm:$0xf] %vm500_vm3, %v507_v29 }
 0x29a   : > { %v518_v30 = vpop.permute.xlu0 %517 }
 0x29b   : > { %790 = vst.msk [vmem:[%s994_s27 + $0x4] sm:$0xf] %vm500_vm3, %v518_v30 }
 0x29c   : > { %v511_v31 = vpop.permute.xlu1 %510 }
 0x29d   : > { %513 = vst.msk [vmem:[%s394_s13] sm:$0xf] %vm500_vm3, %v511_v31 }
 0x29e   : > { %v553_v35 = vpop.permute.xlu0 %552 }
 0x29f   : > { %797 = vst.msk [vmem:[%s385_s10 + $0xc] sm:$0xf] %vm500_vm3, %v553_v35 }
 0x2a0   : > { %v523_v32 = vpop.permute.xlu1 %522 }
 0x2a1   : > { %791 = vst.msk [vmem:[%s385_s10 + $0x4] sm:$0xf] %vm500_vm3, %v523_v32 }
 0x2a4   : > { %v528_v33 = vpop.permute.xlu1 %527 }
 0x2a5   : > { %792 = vst.msk [vmem:[%s394_s13 + $0x4] sm:$0xf] %vm500_vm3, %v528_v33 }
 0x2a8   : > { %v538_v34 = vpop.permute.xlu1 %537 }
 0x2a9   : > { %794 = vst.msk [vmem:[%s385_s10 + $0x8] sm:$0xf] %vm500_vm3, %v538_v34 }
 0x2ac   : > { %v543_v36 = vpop.permute.xlu1 %542 }
 0x2ad   : > { %795 = vst.msk [vmem:[%s394_s13 + $0x8] sm:$0xf] %vm500_vm3, %v543_v36 }
 0x2b0   : > { %v533_v37 = vpop.permute.xlu1 %532 }
 0x2b1   : > { %793 = vst.msk [vmem:[%s994_s27 + $0x8] sm:$0xf] %vm500_vm3, %v533_v37 }
 0x2b4   : > { %v548_v38 = vpop.permute.xlu1 %547 }
 0x2b5   : > { %796 = vst.msk [vmem:[%s994_s27 + $0xc] sm:$0xf] %vm500_vm3, %v548_v38 }
 0x2b8   : > { %v558_v39 = vpop.permute.xlu1 %557 }
 0x2b9   : > { %798 = vst.msk [vmem:[%s394_s13 + $0xc] sm:$0xf] %vm500_vm3, %v558_v39 }
 0x2ba PF: > { %s19_s29 = sadd.s32 1, %s877_s29   ;;  %s1038_s27 = smov %s873_s28 }
 0x2bb   : > { %p16_p6 = scmp.ge.s32.totalorder %s19_s29, 4   ;;  %s1039_s28 = smov %s1041_s30 }
 0x2bd   :  { %18 = sbr.rel (!%p16_p6) target bundleno = 2 (0x2), region = 115 }

// kernel: gpt2_forward.17
= control target key start
LH: loop header
LB: loop body
LE: loop exit
PB: predicated region body
PF: predicated region fallthrough
CT: control target
= control target key end

     0   :  { %vm19_vm0 = vcmask 254976   ;;  %v214_v3 = vmov 0.0|0.0   ;;  %v215_v6 = vmov 0.0   ;;  %vm216_vm1 = vmmov 0   ;;  %s299_s0 = inlined_call_operand.vmem [shape: bf16[8,2,32], index: 0, kind: input, shape index: {}]   ;;  %s300_s1 = inlined_call_operand.vmem [shape: f32[32,8], index: 1, kind: input, shape index: {}]   ;;  %s301_s2 = inlined_call_operand.vmem [shape: f32[1,8], index: 2, kind: input, shape index: {}]   ;;  %s302_s3 = inlined_call_operand.hbm [shape: f32[2,8], index: 3, kind: output, shape index: {}]  }
   0x1   :  { %v61_v0 = vld [vmem:[%s300_s1] sm:$0xff]  ;;  %v62_v1 = vld [vmem:[%s300_s1 + $0x8] sm:$0xff]  ;;  %v63_v2 = vld [vmem:[%s300_s1 + $0x10] sm:$0xff]  ;;  %180 = vmatprep.subr.bf16.mxu0 %v214_v3  ;;  %20 = vst.msk [vmem:[#allocation2] sm:$0x3] %vm19_vm0, %v215_v6  ;;  %177 = vmatprep.mubr.msk.f32.mxu0 %vm216_vm1, %v215_v6 }
   0x2   :  { %v181_v4 = vpack.c.bf16 %v62_v1, %v61_v0  ;;  %v64_v5 = vld [vmem:[%s300_s1 + $0x18] sm:$0xff]  ;;  %v22_v7 = vld [vmem:[%s299_s0] sm:$0x1]  ;;  %v23_v8 = vld [vmem:[%s299_s0 + $0x1] sm:$0x1] }
   0x3   :  { %v24_v9 = vld [vmem:[%s299_s0 + $0x2] sm:$0x1]  ;;  %v25_v10 = vld [vmem:[%s299_s0 + $0x3] sm:$0x1]  ;;  %v26_v11 = vld [vmem:[%s299_s0 + $0x4] sm:$0x1]  ;;  %v30_v12 = vunpack.c.l.bf16 %v22_v7  ;;  %v31_v13 = vunpack.c.l.bf16 %v23_v8  ;;  %v184_v14 = vpack.c.bf16 %v64_v5, %v63_v2 }
   0x4   :  { %182 = vmatpush3.bf16.msra.mxu0 %v181_v4  ;;  %v32_v15 = vunpack.c.l.bf16 %v24_v9  ;;  %v33_v16 = vunpack.c.l.bf16 %v25_v10  ;;  %v27_v17 = vld [vmem:[%s299_s0 + $0x5] sm:$0x1] }
   0x5   :  { %183 = vmatprep.subr.bf16.mxu0 %v214_v3  ;;  %v39_v18 = vsel %vm19_vm0, %v30_v12, 0.0 }
   0x6   :  { %8 = vsyncpa [#allocation4], 0  ;;  %v34_v19 = vunpack.c.l.bf16 %v26_v11  ;;  %v40_v20 = vsel %vm19_vm0, %v31_v13, 0.0  ;;  %v42_v21 = vsel %vm19_vm0, %v32_v15, 0.0  ;;  %v28_v22 = vld [vmem:[%s299_s0 + $0x6] sm:$0x1]  ;;  %v35_v24 = vunpack.c.l.bf16 %v27_v17 }
   0x7   :  { %v41_v23 = vadd.f32 %v40_v20, %v39_v18  ;;  %v44_v25 = vsel %vm19_vm0, %v33_v16, 0.0  ;;  %v29_v26 = vld [vmem:[%s299_s0 + $0x7] sm:$0x1]  ;;  %v36_v28 = vunpack.c.l.bf16 %v28_v22  ;;  %vm72_vm2 = vcmask 261120   ;;  %v162_v43 = vld [vmem:[%s301_s2] ss:$0 sm:$0xff] }
   0x8   :  { %185 = vmatpush3.bf16.msra.mxu0 %v184_v14  ;;  %v46_v29 = vsel %vm19_vm0, %v34_v19, 0.0  ;;  %v37_v31 = vunpack.c.l.bf16 %v29_v26  ;;  %v48_v32 = vsel %vm19_vm0, %v35_v24, 0.0  ;;  %v21_v38 = vld [vmem:[#allocation2] sm:$0x3]  ;;  %s217_s9 = smov [#allocation3]   ;;  %vm146_vm3 = vcmask 58368  }
   0x9   :  { %v43_v27 = vadd.f32 %v42_v21, %v41_v23  ;;  %v50_v34 = vsel %vm19_vm0, %v36_v28, 0.0  ;;  %s154_s10 = sshll.u32 %s217_s9, 4  ;;  %s155_s10 = int_to_ptr.vmem [resolvable:$true] %s154_s10 }
   0xa   :  { %v52_v36 = vsel %vm19_vm0, %v37_v31, 0.0  ;;  %s190_s11 = scalar_lea.vmem %s155_s10, 32  ;;  %p195_p1 = scmp.lt.s32.totalorder %s155_s10, %s155_s10 }
   0xb   :  { %v45_v30 = vadd.f32 %v44_v25, %v43_v27  ;;  %p191_p0 = scmp.ne.s32.totalorder %s155_s10, %s190_s11  ;;  %p196_p2 = scmp.lt.s32.totalorder %s190_s11, %s190_s11 }
   0xd   :  { %v47_v33 = vadd.f32 %v46_v29, %v45_v30  ;;  %p197_p3 = por %p196_p2, %p195_p1 }
   0xf   :  { %v49_v35 = vadd.f32 %v48_v32, %v47_v33  ;;  %p198_p4 = pnand %p197_p3, %p191_p0 }
  0x11   :  { %v51_v37 = vadd.f32 %v50_v34, %v49_v35 }
  0x13   :  { %v53_v39 = vadd.f32 %v52_v36, %v51_v37 }
  0x15   :  { %v54_v40 = vadd.f32 %v53_v39, %v21_v38 }
  0x17   :  { %55 = vst.msk [vmem:[#allocation2] sm:$0x3] %vm19_vm0, %v54_v40 }
  0x1e   :  { %v59_v41 = vld [vmem:[#allocation2] sm:$0x3] }
  0x1f   :  { %v60_v42 = vmul.f32 0.125, %v59_v41 }
  0x21   :  { %178 = vmatmul.mubr.msk.f32.vlgmr.msra.gmra.mrb[0].mxu0 %vm72_vm2, %v60_v42 }
  0xf4   :  { %v142_v44 = vpop.f32.mrb[0].mxu0 }
  0xf5   :  { %v143_v45 = vadd.f32 %v162_v43, %v142_v44  ;;  %v179_v46 = vpop.f32.mrb[1].mxu0 }
  0xf7   :  { %147 = vst.msk [vmem:[#allocation3] sm:$0x3] %vm146_vm3, %v143_v45 }
  0xf8   :  { %201 = shalt.err (!%p198_p4)
}
  0xf9   :  { %s202_s14 = scalar_lea.hbm %s302_s3, 32 }
  0xfa   :  { %p203_p5 = scmp.ne.s32.totalorder %s302_s3, %s202_s14  ;;  %p206_p6 = scmp.lt.u32.totalorder %s202_s14, %s302_s3 }
  0xfc   :  { %p208_p7 = pnand %p206_p6, %p203_p5 }
  0xfe   :  { %211 = shalt.err (!%p208_p7)
}
  0xff   :  { %157 = dma.vmem_to_hbm [thread:$0]  %s155_s10, 32, %s302_s3, [#allocation4]  }
 0x100   :  { %212 = dma.done.wait [#allocation4], 32  }
 0x101   :  { %213 = vsyncadd [#allocation4], 4294967264 }
 0x102   :  { %161 = vsyncpa [#allocation4], 1 }

// kernel: gpt2_forward.16
= control target key start
LH: loop header
LB: loop body
LE: loop exit
PB: predicated region body
PF: predicated region fallthrough
CT: control target
= control target key end

     0   :  { %v263_v1 = vmov 0.0   ;;  %v40_v3 = vlaneseq  ;;  %vm264_vm0 = vmmov 0   ;;  %v265_v12 = vmov 1966171168   ;;  %s335_s0 = inlined_call_operand.vmem [shape: bf16[8,2,32], index: 0, kind: input, shape index: {}]   ;;  %s336_s1 = inlined_call_operand.vmem [shape: bf16[32,64], index: 1, kind: input, shape index: {}]   ;;  %s337_s2 = inlined_call_operand.hbm [shape: bf16[8,2,64], index: 2, kind: output, shape index: {}]  }
   0x1   :  { %v237_v0 = vld [vmem:[%s336_s1] sm:$0xff]   ;;  %222 = vmatprep.subr.bf16.mxu0 %v263_v1  ;;  %v238_v2 = vld [vmem:[%s336_s1 + $0x8] sm:$0xff]   ;;  %226 = vmatprep.mubr.msk.bf16.mxu0 %vm264_vm0, %v263_v1  ;;  %v38_v13 = vunpack.c.l.s4 %v265_v12 }
   0x2   :  { %223 = vmatpush3.bf16.msra.mxu0 %v237_v0  ;;  %v13_v4 = vld [vmem:[%s335_s0] sm:$0x1]  ;;  %v14_v5 = vld [vmem:[%s335_s0 + $0x1] sm:$0x1]  ;;  %v15_v6 = vld [vmem:[%s335_s0 + $0x2] sm:$0x1] }
   0x3   :  { %224 = vmatprep.subr.bf16.mxu0 %v263_v1  ;;  %v16_v7 = vld [vmem:[%s335_s0 + $0x3] sm:$0x1]  ;;  %v17_v8 = vld [vmem:[%s335_s0 + $0x4] sm:$0x1]  ;;  %v18_v9 = vld [vmem:[%s335_s0 + $0x5] sm:$0x1] }
   0x4   :  { %v19_v10 = vld [vmem:[%s335_s0 + $0x6] sm:$0x1]  ;;  %v20_v11 = vld [vmem:[%s335_s0 + $0x7] sm:$0x1]  ;;  %v41_v14 = vshrl.u32 %v40_v3, 7 }
   0x5   :  { %7 = vsyncpa [#allocation3], 0  ;;  %v33_v15 = vcombine.low %v13_v4, %v14_v5  ;;  %v34_v16 = vcombine.low %v15_v6, %v16_v7  ;;  %v35_v17 = vcombine.low %v17_v8, %v18_v9  ;;  %v36_v18 = vcombine.low %v19_v10, %v20_v11  ;;  %s267_s0 = smov [#allocation2]  }
   0x6   :  { %225 = vmatpush3.bf16.msra.mxu0 %v238_v2  ;;  %v39_v19 = vunpack.c.0.s8 %v38_v13  ;;  %vm94_vm1 = vcmask 261120   ;;  %v266_v30 = vmov 1983009808   ;;  %vm191_vm2 = vcmask 516096   ;;  %s205_s28 = sshll.u32 %s267_s0, 4  ;;  %s206_s28 = int_to_ptr.vmem [resolvable:$true] %s205_s28 }
   0x7   :  { %v143_v31 = vunpack.c.l.s4 %v266_v30  ;;  %s239_s29 = scalar_lea.vmem %s206_s28, 128  ;;  %p244_p1 = scmp.lt.s32.totalorder %s206_s28, %s206_s28 }
   0x8   :  { %v42_v20 = vsub.s32 %v39_v19, %v41_v14  ;;  %p240_p0 = scmp.ne.s32.totalorder %s206_s28, %s239_s29  ;;  %p245_p2 = scmp.lt.s32.totalorder %s239_s29, %s239_s29 }
   0x9   :  { %v144_v32 = vunpack.c.0.s8 %v143_v31 }
   0xa   :  { %v43_v21 = vrot.slane %v33_v15, %v42_v20  ;;  %v50_v22 = vrot.slane %v34_v16, %v42_v20  ;;  %v57_v23 = vrot.slane %v35_v17, %v42_v20  ;;  %v64_v24 = vrot.slane %v36_v18, %v42_v20  ;;  %p246_p3 = por %p245_p2, %p244_p1 }
   0xb   :  { %v147_v33 = vsub.s32 %v144_v32, %v41_v14 }
   0xc   :  { %v65_v25 = vcombine.low %v43_v21, %v50_v22  ;;  %v66_v26 = vcombine.low %v57_v23, %v64_v24  ;;  %p247_p4 = pnand %p246_p3, %p240_p0 }
   0xe   :  { %v73_v27 = vrot.slane %v65_v25, %v42_v20  ;;  %v80_v28 = vrot.slane %v66_v26, %v42_v20 }
  0x10   :  { %v81_v29 = vcombine.low %v73_v27, %v80_v28 }
  0x12   :  { %227 = vmatmul.mubr.msk.bf16.vlgmr.msra.gmra.mrb[0].mxu0 %vm94_vm1, %v81_v29 }
  0xe5   :  { %v132_v34 = vpop.f32.mrb[0].mxu0 }
  0xe6   :  { %v141_v35 = vcombine.high %v132_v34, %v132_v34  ;;  %v148_v36 = vrot.slane %v132_v34, %v147_v33  ;;  %v228_v37 = vpop.f32.mrb[1].mxu0 }
  0xe7   :  { %v135_v38 = vpop.f32.mrb[2].mxu0 }
  0xe8   :  { %v155_v39 = vrot.slane %v141_v35, %v147_v33  ;;  %v156_v40 = vcombine.high %v148_v36, %v148_v36  ;;  %v183_v41 = vpack.c.bf16 %v148_v36, %v148_v36  ;;  %v158_v42 = vcombine.high %v135_v38, %v135_v38  ;;  %v229_v43 = vpop.f32.mrb[3].mxu0 }
  0xe9   :  { %v165_v44 = vrot.slane %v135_v38, %v147_v33 }
  0xea   :  { %v157_v45 = vcombine.high %v155_v39, %v155_v39  ;;  %v184_v46 = vpack.c.bf16 %v156_v40, %v156_v40  ;;  %v185_v47 = vpack.c.bf16 %v155_v39, %v155_v39  ;;  %192 = vst.msk [vmem:[#allocation2] sm:$0x1] %vm191_vm2, %v183_v41  ;;  %v172_v48 = vrot.slane %v158_v42, %v147_v33 }
  0xeb   :  { %v173_v49 = vcombine.high %v165_v44, %v165_v44  ;;  %v187_v50 = vpack.c.bf16 %v165_v44, %v165_v44 }
  0xec   :  { %v186_v51 = vpack.c.bf16 %v157_v45, %v157_v45  ;;  %193 = vst.msk [vmem:[#allocation2 + $0x1] sm:$0x1] %vm191_vm2, %v184_v46  ;;  %194 = vst.msk [vmem:[#allocation2 + $0x2] sm:$0x1] %vm191_vm2, %v185_v47  ;;  %v174_v52 = vcombine.high %v172_v48, %v172_v48  ;;  %v189_v53 = vpack.c.bf16 %v172_v48, %v172_v48 }
  0xed   :  { %v188_v54 = vpack.c.bf16 %v173_v49, %v173_v49  ;;  %196 = vst.msk [vmem:[#allocation2 + $0x4] sm:$0x1] %vm191_vm2, %v187_v50 }
  0xee   :  { %195 = vst.msk [vmem:[#allocation2 + $0x3] sm:$0x1] %vm191_vm2, %v186_v51  ;;  %v190_v55 = vpack.c.bf16 %v174_v52, %v174_v52  ;;  %198 = vst.msk [vmem:[#allocation2 + $0x6] sm:$0x1] %vm191_vm2, %v189_v53 }
  0xef   :  { %197 = vst.msk [vmem:[#allocation2 + $0x5] sm:$0x1] %vm191_vm2, %v188_v54 }
  0xf0   :  { %199 = vst.msk [vmem:[#allocation2 + $0x7] sm:$0x1] %vm191_vm2, %v190_v55 }
  0xf1   :  { %250 = shalt.err (!%p247_p4)
}
  0xf2   :  { %s251_s4 = scalar_lea.hbm %s337_s2, 128 }
  0xf3   :  { %p252_p5 = scmp.ne.s32.totalorder %s337_s2, %s251_s4  ;;  %p255_p6 = scmp.lt.u32.totalorder %s251_s4, %s337_s2 }
  0xf5   :  { %p257_p7 = pnand %p255_p6, %p252_p5 }
  0xf7   :  { %260 = shalt.err (!%p257_p7)
}
  0xf8   :  { %s268_s9 = smov 16   ;;  %s269_s10 = smov 1  }
  0xf9   :  { %211 = dma.vmem_to_hbm [thread:$0]  %s206_s28, 128, %s337_s2, [#allocation3], %s268_s9, %s268_s9, %s269_s10  }
  0xfa   :  { %261 = dma.done.wait [#allocation3], 128  }
  0xfb   :  { %262 = vsyncadd [#allocation3], 4294967168 }
  0xfc   :  { %215 = vsyncpa [#allocation3], 1 }

</bundles_post_ra>
